<compile_context>
chip_gen: v7x
topology: tpu7x:2x2x1
jax: 0.10.0
libtpu: 0.0.40
codegen_flags: <defaults>
</compile_context>

<pallas_src>
import functools
import math

import jax
import jax.numpy as jnp
from jax.experimental import pallas as pl
from jax.experimental.pallas import tpu as pltpu

LANE = 128


def _round_up(x, m):
    return (x + m - 1) // m * m


# ----------------------------------------------------------------------------
# Kernel 1: 1x1 conv (matmul) with fused per-sample LayerNorm + ReLU prologue.
# Grid: (B,).  Scale/shift are SMEM scalars indexed by the sample id.
# ----------------------------------------------------------------------------
def _conv1x1_ln_kernel(x_ref, w_ref, b_ref, scale_ref, shift_ref, o_ref):
    bi = pl.program_id(0)
    s = scale_ref[bi].astype(jnp.bfloat16)
    t = shift_ref[bi].astype(jnp.bfloat16)
    x = jnp.maximum(x_ref[0] * s + t, 0.0)                   # (M, K) bf16
    acc = jnp.dot(x, w_ref[...], preferred_element_type=jnp.float32)
    o_ref[0] = (acc + b_ref[...]).astype(o_ref.dtype)


def conv1x1_ln(x, w, b, scale, shift, out_dtype=jnp.bfloat16):
    """relu(x * scale + shift) @ w + b, per sample.
    x: (B, M, K) bf16; w: (K, N) bf16; b: (N,) f32; scale/shift: (B,) f32."""
    B, M, K = x.shape
    _, N = w.shape
    b2 = b.reshape(1, N).astype(jnp.float32)
    return pl.pallas_call(
        _conv1x1_ln_kernel,
        out_shape=jax.ShapeDtypeStruct((B, M, N), out_dtype),
        grid=(B,),
        in_specs=[
            pl.BlockSpec((1, M, K), lambda i: (i, 0, 0)),
            pl.BlockSpec((K, N), lambda i: (0, 0)),
            pl.BlockSpec((1, N), lambda i: (0, 0)),
            pl.BlockSpec(memory_space=pltpu.MemorySpace.SMEM),
            pl.BlockSpec(memory_space=pltpu.MemorySpace.SMEM),
        ],
        out_specs=pl.BlockSpec((1, M, N), lambda i: (i, 0, 0)),
        compiler_params=pltpu.CompilerParams(
            dimension_semantics=("parallel",)),
    )(x, w, b2, scale, shift)


# ----------------------------------------------------------------------------
# Kernel 2: (1,3) conv along W (stride 1 or 2) with fused LN + ReLU prologue.
# All 3 taps and all output W positions are handled in one grid step per
# sample (no tap grid axis, no im2col in HBM).
# ----------------------------------------------------------------------------
def _conv1x3_ln_kernel(stride, x_ref, w_ref, b_ref, scale_ref, shift_ref, o_ref):
    bi = pl.program_id(0)
    s = scale_ref[bi].astype(jnp.bfloat16)
    t = shift_ref[bi].astype(jnp.bfloat16)
    Wout, H = o_ref.shape[1], o_ref.shape[2]

    x = jnp.maximum(x_ref[0] * s + t, 0.0)                   # (Wt, H, C) bf16
    Wt, _, C = x.shape
    if stride == 1:
        taps = [x[dw:dw + Wout] for dw in range(3)]
    else:  # stride == 2: even/odd split instead of strided slicing
        xr = x.reshape(Wt // 2, 2, H, C)
        taps = [xr[:Wout, 0], xr[:Wout, 1], xr[1:Wout + 1, 0]]

    acc = jnp.dot(taps[0].reshape(Wout * H, C), w_ref[0],
                  preferred_element_type=jnp.float32)
    for dw in (1, 2):
        acc = acc + jnp.dot(taps[dw].reshape(Wout * H, C), w_ref[dw],
                            preferred_element_type=jnp.float32)
    acc = acc + b_ref[...]
    o_ref[0] = acc.reshape(Wout, H, -1).astype(o_ref.dtype)


def conv1x3_ln(y1, w3, b, scale, shift, stride, out_dtype=jnp.bfloat16):
    """y1: (B, W, H, C) bf16; w3: (3, C, N) bf16; b: (N,) f32."""
    B, W, H, C = y1.shape
    _, _, N = w3.shape
    Wout = (W - 3) // stride + 1
    x_in = y1
    if stride == 2 and W % 2 == 1:                 # make W even for the reshape
        x_in = jnp.pad(y1, ((0, 0), (0, 1), (0, 0), (0, 0)))
    Wt = x_in.shape[1]
    b2 = b.reshape(1, N).astype(jnp.float32)
    return pl.pallas_call(
        functools.partial(_conv1x3_ln_kernel, stride),
        out_shape=jax.ShapeDtypeStruct((B, Wout, H, N), out_dtype),
        grid=(B,),
        in_specs=[
            pl.BlockSpec((1, Wt, H, C), lambda i: (i, 0, 0, 0)),
            pl.BlockSpec((3, C, N), lambda i: (0, 0, 0)),
            pl.BlockSpec((1, N), lambda i: (0, 0)),
            pl.BlockSpec(memory_space=pltpu.MemorySpace.SMEM),
            pl.BlockSpec(memory_space=pltpu.MemorySpace.SMEM),
        ],
        out_specs=pl.BlockSpec((1, Wout, H, N), lambda i: (i, 0, 0, 0)),
        compiler_params=pltpu.CompilerParams(
            dimension_semantics=("parallel",)),
    )(x_in, w3, b2, scale, shift)


# ----------------------------------------------------------------------------
# Kernel 3: conv3 (1x1, W zero-padded by 1) with fused LN + ReLU prologue AND
# the residual 1x1 projection fused in as a second matmul (+ summed bias).
# The W-pad rows are zeroed in-kernel so the LN shift cannot leak into them.
# ----------------------------------------------------------------------------
def _conv3_res_kernel(xm_ref, xr_ref, wm_ref, wr_ref, b_ref,
                      scale_ref, shift_ref, o_ref):
    bi = pl.program_id(0)
    s = scale_ref[bi].astype(jnp.bfloat16)
    t = shift_ref[bi].astype(jnp.bfloat16)
    _, Wp, H, Cm = xm_ref.shape
    M = Wp * H

    xm = jnp.maximum(xm_ref[0].reshape(M, Cm) * s + t, 0.0)
    rid = jax.lax.broadcasted_iota(jnp.int32, (M, 1), 0)
    keep = (rid >= H) & (rid < M - H)            # zero the W-pad rows
    xm = jnp.where(keep, xm, jnp.zeros_like(xm))

    acc = jnp.dot(xm, wm_ref[...], preferred_element_type=jnp.float32)
    Cr = xr_ref.shape[-1]
    acc = acc + jnp.dot(xr_ref[0].reshape(M, Cr), wr_ref[...],
                        preferred_element_type=jnp.float32)
    acc = acc + b_ref[...]
    o_ref[0] = acc.reshape(Wp, H, -1).astype(o_ref.dtype)


def conv3_residual(y2, xs, wm, wr, bias, scale, shift, out_dtype=jnp.float32):
    """y2: (B, Wout, H, Cm) bf16 (main path, pre-LN); xs: (B, Wout+2, H, Cr)
    bf16 residual-path input; wm/wr weights; bias = c3_b + res_b."""
    B, Wout, H, Cm = y2.shape
    Wp = Wout + 2
    Cr = xs.shape[-1]
    N = wm.shape[1]
    y2p = jnp.pad(y2, ((0, 0), (1, 1), (0, 0), (0, 0)))
    b2 = bias.reshape(1, N).astype(jnp.float32)
    return pl.pallas_call(
        _conv3_res_kernel,
        out_shape=jax.ShapeDtypeStruct((B, Wp, H, N), out_dtype),
        grid=(B,),
        in_specs=[
            pl.BlockSpec((1, Wp, H, Cm), lambda i: (i, 0, 0, 0)),
            pl.BlockSpec((1, Wp, H, Cr), lambda i: (i, 0, 0, 0)),
            pl.BlockSpec((Cm, N), lambda i: (0, 0)),
            pl.BlockSpec((Cr, N), lambda i: (0, 0)),
            pl.BlockSpec((1, N), lambda i: (0, 0)),
            pl.BlockSpec(memory_space=pltpu.MemorySpace.SMEM),
            pl.BlockSpec(memory_space=pltpu.MemorySpace.SMEM),
        ],
        out_specs=pl.BlockSpec((1, Wp, H, N), lambda i: (i, 0, 0, 0)),
        compiler_params=pltpu.CompilerParams(
            dimension_semantics=("parallel",)),
    )(y2p, xs, wm, wr, b2, scale, shift)


# ----------------------------------------------------------------------------
# Per-sample LayerNorm stats -> (scale, shift) scalars.  Padded channels are
# exactly zero, so sums over the padded tensor are exact; only the element
# count uses the real channel dim.
# ----------------------------------------------------------------------------
def _ln_stats(act, real_c):
    # TODO(synk): learned LayerNorm gamma/beta (per (C,H,W) element) would need
    # an extra tiled prologue input; torch default init (1, 0) is used here.
    a = act.astype(jnp.float32)
    cnt = real_c * a.shape[1] * a.shape[2]
    mean = jnp.sum(a, axis=(1, 2, 3)) / cnt
    var = jnp.sum(a * a, axis=(1, 2, 3)) / cnt - mean * mean
    scale = jax.lax.rsqrt(var + 1e-5)
    return scale, -mean * scale


# ----------------------------------------------------------------------------
# ResidualBlock forward (NCHW f32 in / NCHW f32 out)
# ----------------------------------------------------------------------------
def residual_block(x_nchw, params, stride, real_mid):
    B, Cin, H, W = x_nchw.shape
    Cmid = params['c1_w'].shape[1]                 # lane-dense padded mid dim

    # NCHW -> (B, W, H, C) bf16 working layout (W is the conv axis).
    x = jnp.transpose(x_nchw, (0, 3, 2, 1)).astype(jnp.bfloat16)

    # Residual-path input (its 1x1 projection is fused into the conv3 kernel).
    if stride == 2:
        xs = jnp.pad(x, ((0, 0), (1, 1), (0, 0), (0, 0)))[:, 0::2]
        res_w, res_b = params['ofc_w'], params['ofc_b']
    else:
        xs = x
        res_w, res_b = params['fc_w'], params['fc_b']

    # conv1 (1x1) with fused LayerNorm1 + ReLU prologue.
    s1, t1 = _ln_stats(x, Cin)
    y1 = conv1x1_ln(x.reshape(B, W * H, Cin), params['c1_w'], params['c1_b'],
                    s1, t1).reshape(B, W, H, Cmid)

    # conv2 ((1,3) along W, stride) with fused LayerNorm2 + ReLU prologue.
    s2, t2 = _ln_stats(y1, real_mid)
    y2 = conv1x3_ln(y1, params['c2_w'], params['c2_b'], s2, t2, stride)

    # conv3 (1x1, W-pad 1) with fused LayerNorm3/4 + ReLU prologue and the
    # residual projection fused as a second matmul in the same kernel.
    s3, t3 = _ln_stats(y2, real_mid)
    out = conv3_residual(y2, xs, params['c3_w'], res_w,
                         params['c3_b'] + res_b, s3, t3)

    return jnp.transpose(out, (0, 3, 2, 1))        # (B, Cout, H, Wout+2) f32


# ----------------------------------------------------------------------------
# Parameters: base (unpadded, f32) + kernel-ready (bf16, lane-dense padded).
# ----------------------------------------------------------------------------
def init_base_params(key, in_channels, out_channels):
    mid = out_channels // 4
    ks = jax.random.split(key, 10)

    def u(k, fan_in, shape):
        bound = 1.0 / math.sqrt(fan_in)
        return jax.random.uniform(k, shape, jnp.float32, -bound, bound)

    return {
        'fc_w':  u(ks[0], in_channels, (in_channels, out_channels)),
        'fc_b':  u(ks[1], in_channels, (out_channels,)),
        'ofc_w': u(ks[2], in_channels, (in_channels, out_channels)),
        'ofc_b': u(ks[3], in_channels, (out_channels,)),
        'c1_w':  u(ks[4], in_channels, (in_channels, mid)),
        'c1_b':  u(ks[5], in_channels, (mid,)),
        'c2_w':  u(ks[6], 3 * mid, (3, mid, mid)),
        'c2_b':  u(ks[7], 3 * mid, (mid,)),
        'c3_w':  u(ks[8], mid, (mid, out_channels)),
        'c3_b':  u(ks[9], mid, (out_channels,)),
    }


def pad_params_for_kernel(base):
    """One-time prep: cast weights to bf16 and zero-pad the mid channel dim
    up to a lane-dense multiple of 128 (so no per-call pads / masked stores)."""
    mid = base['c1_w'].shape[1]
    pc = _round_up(mid, LANE) - mid
    bf = lambda a: a.astype(jnp.bfloat16)
    return {
        'fc_w':  bf(base['fc_w']),
        'fc_b':  base['fc_b'].astype(jnp.float32),
        'ofc_w': bf(base['ofc_w']),
        'ofc_b': base['ofc_b'].astype(jnp.float32),
        'c1_w':  bf(jnp.pad(base['c1_w'], ((0, 0), (0, pc)))),
        'c1_b':  jnp.pad(base['c1_b'], ((0, pc),)).astype(jnp.float32),
        'c2_w':  bf(jnp.pad(base['c2_w'], ((0, 0), (0, pc), (0, pc)))),
        'c2_b':  jnp.pad(base['c2_b'], ((0, pc),)).astype(jnp.float32),
        'c3_w':  bf(jnp.pad(base['c3_w'], ((0, pc), (0, 0)))),
        'c3_b':  base['c3_b'].astype(jnp.float32),
    }


# ----------------------------------------------------------------------------
# Pure-JAX reference (PyTorch semantics, f32 LayerNorm, bf16 matmul inputs).
# ----------------------------------------------------------------------------
def residual_block_ref(x_nchw, base, stride):
    f32, bf16 = jnp.float32, jnp.bfloat16
    x = jnp.transpose(x_nchw, (0, 3, 2, 1)).astype(bf16)      # (B, W, H, C)

    def ln_relu(t):
        t32 = t.astype(f32)
        mean = jnp.mean(t32, axis=(1, 2, 3), keepdims=True)
        var = jnp.var(t32, axis=(1, 2, 3), keepdims=True)
        return jnp.maximum((t32 - mean) * jax.lax.rsqrt(var + 1e-5),
                           0.0).astype(bf16)

    def conv1x1(t, w, b):
        return jnp.dot(t, w.astype(bf16), preferred_element_type=f32) + b

    if stride == 2:
        xs = jnp.pad(x, ((0, 0), (1, 1), (0, 0), (0, 0)))[:, 0::2]
        res = conv1x1(xs, base['ofc_w'], base['ofc_b'])
    else:
        res = conv1x1(x, base['fc_w'], base['fc_b'])

    y1 = conv1x1(ln_relu(x), base['c1_w'], base['c1_b']).astype(bf16)
    y1n = ln_relu(y1)
    W = x.shape[1]
    Wout = (W - 3) // stride + 1
    y2 = sum(jnp.dot(y1n[:, dw:dw + stride * (Wout - 1) + 1:stride],
                     base['c2_w'][dw].astype(bf16), preferred_element_type=f32)
             for dw in range(3))
    y2 = (y2 + base['c2_b']).astype(bf16)
    y3 = jnp.pad(ln_relu(y2), ((0, 0), (1, 1), (0, 0), (0, 0)))
    out = jnp.dot(y3, base['c3_w'].astype(bf16),
                  preferred_element_type=f32) + base['c3_b']
    out = out + res
    return jnp.transpose(out, (0, 3, 2, 1))


if __name__ == "__main__":
    key = jax.random.PRNGKey(0)
    pkey, xkey = jax.random.split(key)

    # Small shapes consistent with the module: ResidualBlock(64, 128, 8, 16, s).
    B, CIN, COUT, TIME, FREQ = 2, 64, 128, 8, 16
    base = init_base_params(pkey, CIN, COUT)
    params = pad_params_for_kernel(base)
    real_mid = COUT // 4
    x = jax.random.normal(xkey, (B, CIN, TIME, FREQ), dtype=jnp.float32)

    for stride in (1, 2):
        fwd = jax.jit(functools.partial(residual_block, stride=stride,
                                        real_mid=real_mid))
        y = fwd(x, params)
        jax.block_until_ready(y)
        w_out = (FREQ - 3) // stride + 1 + 2
        assert y.shape == (B, COUT, TIME, w_out), y.shape
        assert y.dtype == jnp.float32
        y_ref = residual_block_ref(x, base, stride)
        err = float(jnp.max(jnp.abs(y - y_ref)))
        assert jnp.allclose(y, y_ref, rtol=5e-2, atol=5e-2), err
    print("KERNEL_OK")
</pallas_src>

<mosaic_0001>
module attributes {stable_mosaic.version = 11 : i64} {
  func.func @_conv1x1_ln_kernel(%arg0: i32, %arg1: memref<1x128x64xbf16, #tpu.memory_space<vmem>>, %arg2: memref<64x128xbf16, #tpu.memory_space<vmem>>, %arg3: memref<1x128xf32, #tpu.memory_space<vmem>>, %arg4: memref<2xf32, #tpu.memory_space<smem>>, %arg5: memref<2xf32, #tpu.memory_space<smem>>, %arg6: memref<1x128x128xbf16, #tpu.memory_space<vmem>>) attributes {dimension_semantics = [#tpu.dimension_semantics<parallel>], iteration_bounds = array<i64: 2>, scalar_prefetch = 0 : i64, scratch_operands = 0 : i64, tpu.core_type = #tpu.core_type<tc>, window_params = [{transform_indices = @transform_0, window_bounds = array<i64: 1, 128, 64>}, {pipeline_mode = #tpu.pipeline_mode<synchronous>, transform_indices = @transform_1, window_bounds = array<i64: 64, 128>}, {pipeline_mode = #tpu.pipeline_mode<synchronous>, transform_indices = @transform_2, window_bounds = array<i64: 1, 128>}, {transform_indices = @transform_3, window_bounds = array<i64: 2>}, {transform_indices = @transform_4, window_bounds = array<i64: 2>}, {transform_indices = @transform_5, window_bounds = array<i64: 1, 128, 128>}]} {
    %0 = arith.index_cast %arg0 : i32 to index
    %1 = memref.load %arg4[%0] : memref<2xf32, #tpu.memory_space<smem>>
    %2 = arith.truncf %1 : f32 to bf16
    %3 = arith.index_cast %arg0 : i32 to index
    %4 = memref.load %arg5[%3] : memref<2xf32, #tpu.memory_space<smem>>
    %5 = arith.truncf %4 : f32 to bf16
    %c0 = arith.constant 0 : index
    %c0_0 = arith.constant 0 : index
    %c0_1 = arith.constant 0 : index
    %6 = vector.load %arg1[%c0, %c0_0, %c0_1] : memref<1x128x64xbf16, #tpu.memory_space<vmem>>, vector<1x128x64xbf16>
    %7 = vector.shape_cast %6 : vector<1x128x64xbf16> to vector<128x64xbf16>
    %8 = vector.broadcast %2 : bf16 to vector<128x64xbf16>
    %9 = arith.mulf %7, %8 : vector<128x64xbf16>
    %10 = vector.broadcast %5 : bf16 to vector<128x64xbf16>
    %11 = arith.addf %9, %10 : vector<128x64xbf16>
    %cst = arith.constant 0.000000e+00 : bf16
    %12 = vector.broadcast %cst : bf16 to vector<128x64xbf16>
    %13 = arith.maximumf %11, %12 : vector<128x64xbf16>
    %c0_2 = arith.constant 0 : index
    %c0_3 = arith.constant 0 : index
    %14 = vector.load %arg2[%c0_2, %c0_3] : memref<64x128xbf16, #tpu.memory_space<vmem>>, vector<64x128xbf16>
    %cst_4 = arith.constant dense<0.000000e+00> : vector<128x128xf32>
    %15 = tpu.matmul %13, %14, %cst_4 {dimension_numbers = #tpu.dot_dimension_numbers<[1], [0], [0], [1], [0, 0, 1, 1], [], []>} : vector<128x64xbf16>, vector<64x128xbf16>, vector<128x128xf32> -> vector<128x128xf32>
    %c0_5 = arith.constant 0 : index
    %c0_6 = arith.constant 0 : index
    %16 = vector.load %arg3[%c0_5, %c0_6] : memref<1x128xf32, #tpu.memory_space<vmem>>, vector<1x128xf32>
    %17 = vector.broadcast %16 : vector<1x128xf32> to vector<128x128xf32>
    %18 = arith.addf %15, %17 : vector<128x128xf32>
    %19 = arith.truncf %18 : vector<128x128xf32> to vector<128x128xbf16>
    %c0_7 = arith.constant 0 : index
    %c0_8 = arith.constant 0 : index
    %c0_9 = arith.constant 0 : index
    %20 = vector.load %arg6[%c0_7, %c0_8, %c0_9] : memref<1x128x128xbf16, #tpu.memory_space<vmem>>, vector<1x128x128xbf16>
    %21 = vector.shape_cast %20 : vector<1x128x128xbf16> to vector<128x128xbf16>
    %22 = vector.shape_cast %19 : vector<128x128xbf16> to vector<1x128x128xbf16>
    tpu.vector_store %arg6[%c0_7, %c0_8, %c0_9], %22 {strides = array<i32>} : memref<1x128x128xbf16, #tpu.memory_space<vmem>>, vector<1x128x128xbf16>,
    return
  }
  func.func @transform_0(%arg0: i32) -> (i32, i32, i32) {
    %c0_i32 = arith.constant 0 : i32
    %c0_i32_0 = arith.constant 0 : i32
    %c0_i32_1 = arith.constant 0 : i32
    return %arg0, %c0_i32, %c0_i32_0 : i32, i32, i32
  }
  func.func @transform_1(%arg0: i32) -> (i32, i32) {
    %c0_i32 = arith.constant 0 : i32
    %c0_i32_0 = arith.constant 0 : i32
    %c0_i32_1 = arith.constant 0 : i32
    return %c0_i32, %c0_i32_0 : i32, i32
  }
  func.func @transform_2(%arg0: i32) -> (i32, i32) {
    %c0_i32 = arith.constant 0 : i32
    %c0_i32_0 = arith.constant 0 : i32
    %c0_i32_1 = arith.constant 0 : i32
    return %c0_i32, %c0_i32_0 : i32, i32
  }
  func.func @transform_3(%arg0: i32) -> i32 {
    %c0_i32 = arith.constant 0 : i32
    %c0_i32_0 = arith.constant 0 : i32
    return %c0_i32 : i32
  }
  func.func @transform_4(%arg0: i32) -> i32 {
    %c0_i32 = arith.constant 0 : i32
    %c0_i32_0 = arith.constant 0 : i32
    return %c0_i32 : i32
  }
  func.func @transform_5(%arg0: i32) -> (i32, i32, i32) {
    %c0_i32 = arith.constant 0 : i32
    %c0_i32_0 = arith.constant 0 : i32
    %c0_i32_1 = arith.constant 0 : i32
    return %arg0, %c0_i32, %c0_i32_0 : i32, i32, i32
  }
}

module attributes {stable_mosaic.version = 11 : i64} {
  func.func @_conv1x3_ln_kernel(%arg0: i32, %arg1: memref<1x16x8x128xbf16, #tpu.memory_space<vmem>>, %arg2: memref<3x128x128xbf16, #tpu.memory_space<vmem>>, %arg3: memref<1x128xf32, #tpu.memory_space<vmem>>, %arg4: memref<2xf32, #tpu.memory_space<smem>>, %arg5: memref<2xf32, #tpu.memory_space<smem>>, %arg6: memref<1x14x8x128xbf16, #tpu.memory_space<vmem>>) attributes {dimension_semantics = [#tpu.dimension_semantics<parallel>], iteration_bounds = array<i64: 2>, scalar_prefetch = 0 : i64, scratch_operands = 0 : i64, tpu.core_type = #tpu.core_type<tc>, window_params = [{transform_indices = @transform_0, window_bounds = array<i64: 1, 16, 8, 128>}, {pipeline_mode = #tpu.pipeline_mode<synchronous>, transform_indices = @transform_1, window_bounds = array<i64: 3, 128, 128>}, {pipeline_mode = #tpu.pipeline_mode<synchronous>, transform_indices = @transform_2, window_bounds = array<i64: 1, 128>}, {transform_indices = @transform_3, window_bounds = array<i64: 2>}, {transform_indices = @transform_4, window_bounds = array<i64: 2>}, {transform_indices = @transform_5, window_bounds = array<i64: 1, 14, 8, 128>}]} {
    %0 = arith.index_cast %arg0 : i32 to index
    %1 = memref.load %arg4[%0] : memref<2xf32, #tpu.memory_space<smem>>
    %2 = arith.truncf %1 : f32 to bf16
    %3 = arith.index_cast %arg0 : i32 to index
    %4 = memref.load %arg5[%3] : memref<2xf32, #tpu.memory_space<smem>>
    %5 = arith.truncf %4 : f32 to bf16
    %c0 = arith.constant 0 : index
    %c0_0 = arith.constant 0 : index
    %c0_1 = arith.constant 0 : index
    %c0_2 = arith.constant 0 : index
    %6 = vector.load %arg1[%c0, %c0_0, %c0_1, %c0_2] : memref<1x16x8x128xbf16, #tpu.memory_space<vmem>>, vector<1x16x8x128xbf16>
    %7 = vector.shape_cast %6 : vector<1x16x8x128xbf16> to vector<16x8x128xbf16>
    %8 = vector.broadcast %2 : bf16 to vector<16x8x128xbf16>
    %9 = arith.mulf %7, %8 : vector<16x8x128xbf16>
    %10 = vector.broadcast %5 : bf16 to vector<16x8x128xbf16>
    %11 = arith.addf %9, %10 : vector<16x8x128xbf16>
    %cst = arith.constant 0.000000e+00 : bf16
    %12 = vector.broadcast %cst : bf16 to vector<16x8x128xbf16>
    %13 = arith.maximumf %11, %12 : vector<16x8x128xbf16>
    %14 = vector.extract_strided_slice %13 {offsets = [0, 0, 0], sizes = [14, 8, 128], strides = [1, 1, 1]} : vector<16x8x128xbf16> to vector<14x8x128xbf16>
    %15 = vector.extract_strided_slice %13 {offsets = [1, 0, 0], sizes = [14, 8, 128], strides = [1, 1, 1]} : vector<16x8x128xbf16> to vector<14x8x128xbf16>
    %16 = vector.extract_strided_slice %13 {offsets = [2, 0, 0], sizes = [14, 8, 128], strides = [1, 1, 1]} : vector<16x8x128xbf16> to vector<14x8x128xbf16>
    %17 = vector.shape_cast %14 : vector<14x8x128xbf16> to vector<112x128xbf16>
    %c0_3 = arith.constant 0 : index
    %c0_4 = arith.constant 0 : index
    %c0_5 = arith.constant 0 : index
    %18 = vector.load %arg2[%c0_3, %c0_4, %c0_5] : memref<3x128x128xbf16, #tpu.memory_space<vmem>>, vector<1x128x128xbf16>
    %19 = vector.shape_cast %18 : vector<1x128x128xbf16> to vector<128x128xbf16>
    %cst_6 = arith.constant dense<0.000000e+00> : vector<112x128xf32>
    %20 = tpu.matmul %17, %19, %cst_6 {dimension_numbers = #tpu.dot_dimension_numbers<[1], [0], [0], [1], [0, 0, 1, 1], [], []>} : vector<112x128xbf16>, vector<128x128xbf16>, vector<112x128xf32> -> vector<112x128xf32>
    %21 = vector.shape_cast %15 : vector<14x8x128xbf16> to vector<112x128xbf16>
    %c1 = arith.constant 1 : index
    %c0_7 = arith.constant 0 : index
    %c0_8 = arith.constant 0 : index
    %22 = vector.load %arg2[%c1, %c0_7, %c0_8] : memref<3x128x128xbf16, #tpu.memory_space<vmem>>, vector<1x128x128xbf16>
    %23 = vector.shape_cast %22 : vector<1x128x128xbf16> to vector<128x128xbf16>
    %cst_9 = arith.constant dense<0.000000e+00> : vector<112x128xf32>
    %24 = tpu.matmul %21, %23, %cst_9 {dimension_numbers = #tpu.dot_dimension_numbers<[1], [0], [0], [1], [0, 0, 1, 1], [], []>} : vector<112x128xbf16>, vector<128x128xbf16>, vector<112x128xf32> -> vector<112x128xf32>
    %25 = arith.addf %20, %24 : vector<112x128xf32>
    %26 = vector.shape_cast %16 : vector<14x8x128xbf16> to vector<112x128xbf16>
    %c2 = arith.constant 2 : index
    %c0_10 = arith.constant 0 : index
    %c0_11 = arith.constant 0 : index
    %27 = vector.load %arg2[%c2, %c0_10, %c0_11] : memref<3x128x128xbf16, #tpu.memory_space<vmem>>, vector<1x128x128xbf16>
    %28 = vector.shape_cast %27 : vector<1x128x128xbf16> to vector<128x128xbf16>
    %cst_12 = arith.constant dense<0.000000e+00> : vector<112x128xf32>
    %29 = tpu.matmul %26, %28, %cst_12 {dimension_numbers = #tpu.dot_dimension_numbers<[1], [0], [0], [1], [0, 0, 1, 1], [], []>} : vector<112x128xbf16>, vector<128x128xbf16>, vector<112x128xf32> -> vector<112x128xf32>
    %30 = arith.addf %25, %29 : vector<112x128xf32>
    %c0_13 = arith.constant 0 : index
    %c0_14 = arith.constant 0 : index
    %31 = vector.load %arg3[%c0_13, %c0_14] : memref<1x128xf32, #tpu.memory_space<vmem>>, vector<1x128xf32>
    %32 = vector.broadcast %31 : vector<1x128xf32> to vector<112x128xf32>
    %33 = arith.addf %30, %32 : vector<112x128xf32>
    %34 = vector.shape_cast %33 : vector<112x128xf32> to vector<14x8x128xf32>
    %35 = arith.truncf %34 : vector<14x8x128xf32> to vector<14x8x128xbf16>
    %c0_15 = arith.constant 0 : index
    %c0_16 = arith.constant 0 : index
    %c0_17 = arith.constant 0 : index
    %c0_18 = arith.constant 0 : index
    %36 = vector.load %arg6[%c0_15, %c0_16, %c0_17, %c0_18] : memref<1x14x8x128xbf16, #tpu.memory_space<vmem>>, vector<1x14x8x128xbf16>
    %37 = vector.shape_cast %36 : vector<1x14x8x128xbf16> to vector<14x8x128xbf16>
    %38 = vector.shape_cast %35 : vector<14x8x128xbf16> to vector<1x14x8x128xbf16>
    tpu.vector_store %arg6[%c0_15, %c0_16, %c0_17, %c0_18], %38 {strides = array<i32>} : memref<1x14x8x128xbf16, #tpu.memory_space<vmem>>, vector<1x14x8x128xbf16>,
    return
  }
  func.func @transform_0(%arg0: i32) -> (i32, i32, i32, i32) {
    %c0_i32 = arith.constant 0 : i32
    %c0_i32_0 = arith.constant 0 : i32
    %c0_i32_1 = arith.constant 0 : i32
    %c0_i32_2 = arith.constant 0 : i32
    return %arg0, %c0_i32, %c0_i32_0, %c0_i32_1 : i32, i32, i32, i32
  }
  func.func @transform_1(%arg0: i32) -> (i32, i32, i32) {
    %c0_i32 = arith.constant 0 : i32
    %c0_i32_0 = arith.constant 0 : i32
    %c0_i32_1 = arith.constant 0 : i32
    %c0_i32_2 = arith.constant 0 : i32
    return %c0_i32, %c0_i32_0, %c0_i32_1 : i32, i32, i32
  }
  func.func @transform_2(%arg0: i32) -> (i32, i32) {
    %c0_i32 = arith.constant 0 : i32
    %c0_i32_0 = arith.constant 0 : i32
    %c0_i32_1 = arith.constant 0 : i32
    return %c0_i32, %c0_i32_0 : i32, i32
  }
  func.func @transform_3(%arg0: i32) -> i32 {
    %c0_i32 = arith.constant 0 : i32
    %c0_i32_0 = arith.constant 0 : i32
    return %c0_i32 : i32
  }
  func.func @transform_4(%arg0: i32) -> i32 {
    %c0_i32 = arith.constant 0 : i32
    %c0_i32_0 = arith.constant 0 : i32
    return %c0_i32 : i32
  }
  func.func @transform_5(%arg0: i32) -> (i32, i32, i32, i32) {
    %c0_i32 = arith.constant 0 : i32
    %c0_i32_0 = arith.constant 0 : i32
    %c0_i32_1 = arith.constant 0 : i32
    %c0_i32_2 = arith.constant 0 : i32
    return %arg0, %c0_i32, %c0_i32_0, %c0_i32_1 : i32, i32, i32, i32
  }
}

module attributes {stable_mosaic.version = 11 : i64} {
  func.func @_conv3_res_kernel(%arg0: i32, %arg1: memref<1x16x8x128xbf16, #tpu.memory_space<vmem>>, %arg2: memref<1x16x8x64xbf16, #tpu.memory_space<vmem>>, %arg3: memref<128x128xbf16, #tpu.memory_space<vmem>>, %arg4: memref<64x128xbf16, #tpu.memory_space<vmem>>, %arg5: memref<1x128xf32, #tpu.memory_space<vmem>>, %arg6: memref<2xf32, #tpu.memory_space<smem>>, %arg7: memref<2xf32, #tpu.memory_space<smem>>, %arg8: memref<1x16x8x128xf32, #tpu.memory_space<vmem>>) attributes {dimension_semantics = [#tpu.dimension_semantics<parallel>], iteration_bounds = array<i64: 2>, scalar_prefetch = 0 : i64, scratch_operands = 0 : i64, tpu.core_type = #tpu.core_type<tc>, window_params = [{transform_indices = @transform_0, window_bounds = array<i64: 1, 16, 8, 128>}, {transform_indices = @transform_1, window_bounds = array<i64: 1, 16, 8, 64>}, {pipeline_mode = #tpu.pipeline_mode<synchronous>, transform_indices = @transform_2, window_bounds = array<i64: 128, 128>}, {pipeline_mode = #tpu.pipeline_mode<synchronous>, transform_indices = @transform_3, window_bounds = array<i64: 64, 128>}, {pipeline_mode = #tpu.pipeline_mode<synchronous>, transform_indices = @transform_4, window_bounds = array<i64: 1, 128>}, {transform_indices = @transform_5, window_bounds = array<i64: 2>}, {transform_indices = @transform_6, window_bounds = array<i64: 2>}, {transform_indices = @transform_7, window_bounds = array<i64: 1, 16, 8, 128>}]} {
    %0 = arith.index_cast %arg0 : i32 to index
    %1 = memref.load %arg6[%0] : memref<2xf32, #tpu.memory_space<smem>>
    %2 = arith.truncf %1 : f32 to bf16
    %3 = arith.index_cast %arg0 : i32 to index
    %4 = memref.load %arg7[%3] : memref<2xf32, #tpu.memory_space<smem>>
    %5 = arith.truncf %4 : f32 to bf16
    %c0 = arith.constant 0 : index
    %c0_0 = arith.constant 0 : index
    %c0_1 = arith.constant 0 : index
    %c0_2 = arith.constant 0 : index
    %6 = vector.load %arg1[%c0, %c0_0, %c0_1, %c0_2] : memref<1x16x8x128xbf16, #tpu.memory_space<vmem>>, vector<1x16x8x128xbf16>
    %7 = vector.shape_cast %6 : vector<1x16x8x128xbf16> to vector<16x8x128xbf16>
    %8 = vector.shape_cast %7 : vector<16x8x128xbf16> to vector<128x128xbf16>
    %9 = vector.broadcast %2 : bf16 to vector<128x128xbf16>
    %10 = arith.mulf %8, %9 : vector<128x128xbf16>
    %11 = vector.broadcast %5 : bf16 to vector<128x128xbf16>
    %12 = arith.addf %10, %11 : vector<128x128xbf16>
    %cst = arith.constant 0.000000e+00 : bf16
    %13 = vector.broadcast %cst : bf16 to vector<128x128xbf16>
    %14 = arith.maximumf %12, %13 : vector<128x128xbf16>
    %15 = tpu.iota {dimensions = array<i32: 0>} : vector<128x1xi32>
    %c8_i32 = arith.constant 8 : i32
    %16 = vector.broadcast %c8_i32 : i32 to vector<128x1xi32>
    %17 = arith.cmpi sge, %15, %16 : vector<128x1xi32>
    %c120_i32 = arith.constant 120 : i32
    %18 = vector.broadcast %c120_i32 : i32 to vector<128x1xi32>
    %19 = arith.cmpi slt, %15, %18 : vector<128x1xi32>
    %20 = arith.andi %17, %19 : vector<128x1xi1>
    %cst_3 = arith.constant 0.000000e+00 : bf16
    %21 = vector.broadcast %cst_3 : bf16 to vector<128x128xbf16>
    %22 = vector.shape_cast %20 : vector<128x1xi1> to vector<128x1xi1>
    %23 = vector.broadcast %22 : vector<128x1xi1> to vector<128x128xi1>
    %24 = arith.select %23, %14, %21 : vector<128x128xi1>, vector<128x128xbf16>
    %c0_4 = arith.constant 0 : index
    %c0_5 = arith.constant 0 : index
    %25 = vector.load %arg3[%c0_4, %c0_5] : memref<128x128xbf16, #tpu.memory_space<vmem>>, vector<128x128xbf16>
    %cst_6 = arith.constant dense<0.000000e+00> : vector<128x128xf32>
    %26 = tpu.matmul %24, %25, %cst_6 {dimension_numbers = #tpu.dot_dimension_numbers<[1], [0], [0], [1], [0, 0, 1, 1], [], []>} : vector<128x128xbf16>, vector<128x128xbf16>, vector<128x128xf32> -> vector<128x128xf32>
    %c0_7 = arith.constant 0 : index
    %c0_8 = arith.constant 0 : index
    %c0_9 = arith.constant 0 : index
    %c0_10 = arith.constant 0 : index
    %27 = vector.load %arg2[%c0_7, %c0_8, %c0_9, %c0_10] : memref<1x16x8x64xbf16, #tpu.memory_space<vmem>>, vector<1x16x8x64xbf16>
    %28 = vector.shape_cast %27 : vector<1x16x8x64xbf16> to vector<16x8x64xbf16>
    %29 = vector.shape_cast %28 : vector<16x8x64xbf16> to vector<128x64xbf16>
    %c0_11 = arith.constant 0 : index
    %c0_12 = arith.constant 0 : index
    %30 = vector.load %arg4[%c0_11, %c0_12] : memref<64x128xbf16, #tpu.memory_space<vmem>>, vector<64x128xbf16>
    %cst_13 = arith.constant dense<0.000000e+00> : vector<128x128xf32>
    %31 = tpu.matmul %29, %30, %cst_13 {dimension_numbers = #tpu.dot_dimension_numbers<[1], [0], [0], [1], [0, 0, 1, 1], [], []>} : vector<128x64xbf16>, vector<64x128xbf16>, vector<128x128xf32> -> vector<128x128xf32>
    %32 = arith.addf %26, %31 : vector<128x128xf32>
    %c0_14 = arith.constant 0 : index
    %c0_15 = arith.constant 0 : index
    %33 = vector.load %arg5[%c0_14, %c0_15] : memref<1x128xf32, #tpu.memory_space<vmem>>, vector<1x128xf32>
    %34 = vector.broadcast %33 : vector<1x128xf32> to vector<128x128xf32>
    %35 = arith.addf %32, %34 : vector<128x128xf32>
    %36 = vector.shape_cast %35 : vector<128x128xf32> to vector<16x8x128xf32>
    %c0_16 = arith.constant 0 : index
    %c0_17 = arith.constant 0 : index
    %c0_18 = arith.constant 0 : index
    %c0_19 = arith.constant 0 : index
    %37 = vector.load %arg8[%c0_16, %c0_17, %c0_18, %c0_19] : memref<1x16x8x128xf32, #tpu.memory_space<vmem>>, vector<1x16x8x128xf32>
    %38 = vector.shape_cast %37 : vector<1x16x8x128xf32> to vector<16x8x128xf32>
    %39 = vector.shape_cast %36 : vector<16x8x128xf32> to vector<1x16x8x128xf32>
    tpu.vector_store %arg8[%c0_16, %c0_17, %c0_18, %c0_19], %39 {strides = array<i32>} : memref<1x16x8x128xf32, #tpu.memory_space<vmem>>, vector<1x16x8x128xf32>,
    return
  }
  func.func @transform_0(%arg0: i32) -> (i32, i32, i32, i32) {
    %c0_i32 = arith.constant 0 : i32
    %c0_i32_0 = arith.constant 0 : i32
    %c0_i32_1 = arith.constant 0 : i32
    %c0_i32_2 = arith.constant 0 : i32
    return %arg0, %c0_i32, %c0_i32_0, %c0_i32_1 : i32, i32, i32, i32
  }
  func.func @transform_1(%arg0: i32) -> (i32, i32, i32, i32) {
    %c0_i32 = arith.constant 0 : i32
    %c0_i32_0 = arith.constant 0 : i32
    %c0_i32_1 = arith.constant 0 : i32
    %c0_i32_2 = arith.constant 0 : i32
    return %arg0, %c0_i32, %c0_i32_0, %c0_i32_1 : i32, i32, i32, i32
  }
  func.func @transform_2(%arg0: i32) -> (i32, i32) {
    %c0_i32 = arith.constant 0 : i32
    %c0_i32_0 = arith.constant 0 : i32
    %c0_i32_1 = arith.constant 0 : i32
    return %c0_i32, %c0_i32_0 : i32, i32
  }
  func.func @transform_3(%arg0: i32) -> (i32, i32) {
    %c0_i32 = arith.constant 0 : i32
    %c0_i32_0 = arith.constant 0 : i32
    %c0_i32_1 = arith.constant 0 : i32
    return %c0_i32, %c0_i32_0 : i32, i32
  }
  func.func @transform_4(%arg0: i32) -> (i32, i32) {
    %c0_i32 = arith.constant 0 : i32
    %c0_i32_0 = arith.constant 0 : i32
    %c0_i32_1 = arith.constant 0 : i32
    return %c0_i32, %c0_i32_0 : i32, i32
  }
  func.func @transform_5(%arg0: i32) -> i32 {
    %c0_i32 = arith.constant 0 : i32
    %c0_i32_0 = arith.constant 0 : i32
    return %c0_i32 : i32
  }
  func.func @transform_6(%arg0: i32) -> i32 {
    %c0_i32 = arith.constant 0 : i32
    %c0_i32_0 = arith.constant 0 : i32
    return %c0_i32 : i32
  }
  func.func @transform_7(%arg0: i32) -> (i32, i32, i32, i32) {
    %c0_i32 = arith.constant 0 : i32
    %c0_i32_0 = arith.constant 0 : i32
    %c0_i32_1 = arith.constant 0 : i32
    %c0_i32_2 = arith.constant 0 : i32
    return %arg0, %c0_i32, %c0_i32_0, %c0_i32_1 : i32, i32, i32, i32
  }
}

</mosaic_0001>

<bundles_post_ra>
// kernel: residual_block.3
= control target key start
LH: loop header
LB: loop body
LE: loop exit
PB: predicated region body
PF: predicated region fallthrough
CT: control target
= control target key end

     0   :  { %10 = vsyncpa [#allocation3], 0  ;;  %s1128_s0 = inlined_call_operand.vmem [shape: bf16[2,128,64], index: 0, kind: input, shape index: {}]   ;;  %s1129_s1 = inlined_call_operand.vmem [shape: bf16[64,128], index: 1, kind: input, shape index: {}]   ;;  %s1130_s2 = inlined_call_operand.vmem [shape: f32[1,128], index: 2, kind: input, shape index: {}]   ;;  %s1131_s3 = inlined_call_operand.vmem [shape: f32[2], index: 3, kind: input, shape index: {}]   ;;  %s1132_s4 = inlined_call_operand.vmem [shape: f32[2], index: 4, kind: input, shape index: {}]   ;;  %s1133_s5 = inlined_call_operand.vmem [shape: bf16[2,128,128], index: 5, kind: output, shape index: {}]  }
   0x1   :  { %11 = vsyncpa [#allocation5], 0  ;;  %s979_s18 = smov 0  }
   0x2 LB: > { %s985_s19 = sadd.s32 4294967295, %s944_s18   ;;  %p707_p0 = scmp.ge.s32.totalorder %s944_s18, 1  ;;  %s944_s18 = sphi %s979_s18, %s17_s18  }
   0x3   : > { %p158_p1 = scmp.lt.s32.totalorder %s944_s18, 3  ;;  %s177_s22 = sshll.u32 %s1131_s3, 4  ;;  %s178_s22 = int_to_ptr.vmem [resolvable:$true] %s177_s22 }
   0x4   : > { %p1134_p3 = scmp.eq.s32.totalorder %s985_s19, 0  ;;  %s188_s26 = sshll.u32 %s1132_s4, 4  ;;  %s189_s26 = int_to_ptr.vmem [resolvable:$true] %s188_s26 }
   0x5   : > { %p992_p2 = pnand %p707_p0, %p158_p1  ;;  %s900_s28 = scalar_lea.vmem %s178_s22, 16 }
   0x6   : > { %p901_p6 = scmp.ne.s32.totalorder %s178_s22, %s900_s28  ;;  %p908_p10 = scmp.lt.s32.totalorder %s178_s22, %s178_s22 }
   0x7   : > { %s1136_s23 = scalar_select %p992_p2, 1, 0 }
   0x8   : > { %p874_p4 = pneg %p992_p2  ;;  %p909_p11 = scmp.lt.s32.totalorder %s900_s28, %s900_s28 }
   0xa   : > { %p1004_p5 = pnand %p1134_p3, %p874_p4  ;;  %p910_p12 = por %p909_p11, %p908_p10 }
   0xc   : > { %p902_p7 = pneg %p1004_p5 }
   0xe   : > { %p903_p8 = pnand %p902_p7, %p901_p6 }
  0x10   : > { %p904_p9 = pneg %p903_p8 }
  0x12   : > { %p911_p13 = pnand %p910_p12, %p904_p9 }
  0x14   : > { %914 = shalt.err (!%p911_p13)
}
  0x15   : > { %s946_s29 = smov [#allocation2]   ;;  %s915_s30 = scalar_lea.vmem %s189_s26, 16 }
  0x16   : > { %877 = dma.vmem_to_smem (!%p1004_p5), %s178_s22, 16, %s946_s29, [#allocation3]  }
  0x17   : > { %p916_p0 = scmp.ne.s32.totalorder %s189_s26, %s915_s30  ;;  %p923_p3 = scmp.lt.s32.totalorder %s189_s26, %s189_s26 }
  0x18   : > { %p924_p2 = scmp.lt.s32.totalorder %s915_s30, %s915_s30 }
  0x19   : > { %p918_p1 = pnand %p916_p0, %p902_p7 }
  0x1a   : > { %p925_p6 = por %p924_p2, %p923_p3 }
  0x1b   : > { %p919_p4 = pneg %p918_p1 }
  0x1d   : > { %p926_p8 = pnand %p925_p6, %p919_p4 }
  0x1f   : > { %929 = shalt.err (!%p926_p8)
}
  0x20   : > { %s947_s6 = smov [#allocation4]   ;;  %p1138_p9 = scmp.ne.s32.totalorder %s1136_s23, 0 }
  0x21   : > { %880 = dma.vmem_to_smem (!%p1004_p5), %s189_s26, 16, %s947_s6, [#allocation5]  }
  0x22   : > { %209 = sbr.rel (%p1138_p9) target bundleno = 303 (0x12f), region = 40  ;;  %p1139_p10 = scmp.eq.s32.totalorder (!%p1138_p9), %s985_s19, 0 }
  0x29   : > { %935 = dma.done.wait (%p1139_p10), [#allocation3], 16   ;;  %p1140_p11 = pmov %p1139_p10 }
  0x2a   : > { %p1141_p7 = pmov %p1139_p10 }
  0x2b   : > { %937 = vsyncadd (%p1140_p11), [#allocation3], 4294967280 }
  0x2c   : > { %939 = dma.done.wait (%p1141_p7), [#allocation5], 16   ;;  %p1142_p2 = pmov %p1141_p7 }
  0x2e   : > { %941 = vsyncadd (%p1142_p2), [#allocation5], 4294967280 }
  0x2f   : > { %219 = sfence }
  0x30   : > { %v896_v0 = vld [vmem:[%s1129_s1] sm:$0xff]   ;;  %p242_p3 = scmp.lt.s32.totalorder %s985_s19, 1  ;;  %v897_v1 = vld [vmem:[%s1129_s1 + $0x8] sm:$0xff]   ;;  %s1032_s11 = sld [smem:[#allocation2 + %s985_s19]]  ;;  %v898_v2 = vld [vmem:[%s1129_s1 + $0x10] sm:$0xff]   ;;  %vm426_vm0 = vcmask 523264  }
  0x31   : > { %834 = vmatprep.subr.bf16.mxu0 %v896_v0  ;;  %858 = vmatprep.subr.bf16.mxu1 %v896_v0  ;;  %s1038_s13 = sld [smem:[#allocation4 + %s985_s19]]  ;;  %v899_v3 = vld [vmem:[%s1129_s1 + $0x18] sm:$0xff]   ;;  %v948_v36 = vmov 0  }
  0x32   : > { %s1035_s12 = scalar_select %p242_p3, %s985_s19, 1  ;;  %835 = vmatpush3.bf16.msra.mxu0 %v896_v0  ;;  %862 = vmatpush3.bf16.msra.mxu1 %v896_v0 }
  0x33   : > { %836 = vmatprep.subr.bf16.mxu0 %v897_v1  ;;  %859 = vmatprep.subr.bf16.mxu1 %v897_v1 }
  0x34   : > { %s757_s16 = sshll.u32 %s1035_s12, 6 }
  0x35   : > { %s1049_s21 = scalar_lea.vmem %s1128_s0, %s757_s16 }
  0x36   : > { %837 = vmatpush3.bf16.msra.mxu0 %v897_v1  ;;  %863 = vmatpush3.bf16.msra.mxu1 %v897_v1  ;;  %s256_s19 = sshrl.u32 %s1032_s11, 16  ;;  %p255_p5 = scmp.ne.f32.partialorder %s1032_s11, %s1032_s11  ;;  %v275_v4 = vld [vmem:[%s1049_s21] sm:$0xf]  ;;  %v276_v5 = vld [vmem:[%s1049_s21 + $0x4] sm:$0xf] }
  0x37   : > { %838 = vmatprep.subr.bf16.mxu0 %v898_v2  ;;  %860 = vmatprep.subr.bf16.mxu1 %v898_v2  ;;  %s257_s24 = sand.u32 1, %s256_s19  ;;  %p266_p12 = scmp.ne.f32.partialorder %s1038_s13, %s1038_s13  ;;  %v283_v6 = vld [vmem:[%s1049_s21 + $0x20] sm:$0xf]  ;;  %v284_v7 = vld [vmem:[%s1049_s21 + $0x24] sm:$0xf] }
  0x38   : > { %s258_s25 = sadd.s32 32767, %s257_s24  ;;  %s267_s27 = sshrl.u32 %s1038_s13, 16  ;;  %v277_v8 = vld [vmem:[%s1049_s21 + $0x8] sm:$0xf]  ;;  %v278_v9 = vld [vmem:[%s1049_s21 + $0xc] sm:$0xf] }
  0x39   : > { %s259_s26 = sadd.s32 %s258_s25, %s1032_s11  ;;  %s268_s29 = sand.u32 1, %s267_s27  ;;  %v285_v10 = vld [vmem:[%s1049_s21 + $0x28] sm:$0xf]  ;;  %v286_v11 = vld [vmem:[%s1049_s21 + $0x2c] sm:$0xf] }
  0x3a   : > { %839 = vmatpush3.bf16.msra.mxu0 %v898_v2  ;;  %864 = vmatpush3.bf16.msra.mxu1 %v898_v2  ;;  %s260_s28 = sand.u32 4294901760, %s259_s26  ;;  %s269_s30 = sadd.s32 32767, %s268_s29  ;;  %v279_v12 = vld [vmem:[%s1049_s21 + $0x10] sm:$0xf]  ;;  %v280_v14 = vld [vmem:[%s1049_s21 + $0x14] sm:$0xf] }
  0x3b   : > { %840 = vmatprep.subr.bf16.mxu0 %v899_v3  ;;  %861 = vmatprep.subr.bf16.mxu1 %v899_v3  ;;  %s1144_s28 = smov (%p255_p5, %s260_s28), 2143289344  ;;  %s270_s7 = sadd.s32 %s269_s30, %s1038_s13  ;;  %v287_v15 = vld [vmem:[%s1049_s21 + $0x30] sm:$0xf]  ;;  %v288_v41 = vld [vmem:[%s1049_s21 + $0x34] sm:$0xf] }
  0x3c   : > { %s263_s6 = sshrl.u32 %s1144_s28, 16  ;;  %s271_s8 = sand.u32 4294901760, %s270_s7  ;;  %v281_v46 = vld [vmem:[%s1049_s21 + $0x18] sm:$0xf]  ;;  %v282_v51 = vld [vmem:[%s1049_s21 + $0x1c] sm:$0xf] }
  0x3d   : > { %s291_s9 = sshll.u32 %s263_s6, 16  ;;  %s1146_s8 = smov (%p266_p12, %s271_s8), 2143289344  ;;  %v289_v56 = vld [vmem:[%s1049_s21 + $0x38] sm:$0xf]  ;;  %v290_v57 = vld [vmem:[%s1049_s21 + $0x3c] sm:$0xf] }
  0x3e   : > { %841 = vmatpush3.bf16.msra.mxu0 %v899_v3  ;;  %865 = vmatpush3.bf16.msra.mxu1 %v899_v3  ;;  %s292_s10 = sor.u32 %s291_s9, %s263_s6  ;;  %s274_s11 = sshrl.u32 %s1146_s8, 16 }
  0x3f   : > { %v1074_v13 = vstv %s292_s10  ;;  %s311_s14 = sshll.u32 %s274_s11, 16  ;;  %s1115_s19 = scalar_lea.vmem %s1133_s5, %s757_s16 }
  0x40   : > { %v295_v16 = vmul.bf16 %v1074_v13, %v275_v4  ;;  %v296_v17 = vmul.bf16 %v1074_v13, %v276_v5  ;;  %v303_v18 = vmul.bf16 %v1074_v13, %v283_v6  ;;  %v304_v19 = vmul.bf16 %v1074_v13, %v284_v7  ;;  %s312_s13 = sor.u32 %s311_s14, %s274_s11 }
  0x41   : > { %v297_v20 = vmul.bf16 %v1074_v13, %v277_v8  ;;  %v298_v21 = vmul.bf16 %v1074_v13, %v278_v9  ;;  %v305_v22 = vmul.bf16 %v1074_v13, %v285_v10  ;;  %v306_v23 = vmul.bf16 %v1074_v13, %v286_v11 }
  0x42   : > { %v313_v24 = vstv %s312_s13  ;;  %v299_v25 = vmul.bf16 %v1074_v13, %v279_v12  ;;  %v300_v26 = vmul.bf16 %v1074_v13, %v280_v14  ;;  %v307_v27 = vmul.bf16 %v1074_v13, %v287_v15 }
  0x43   : > { %v315_v28 = vadd.bf16 %v313_v24, %v295_v16  ;;  %v316_v29 = vadd.bf16 %v313_v24, %v296_v17  ;;  %v323_v30 = vadd.bf16 %v313_v24, %v303_v18  ;;  %v324_v31 = vadd.bf16 %v313_v24, %v304_v19  ;;  %v718_v16 = vld [vmem:[%s1130_s2] ss:$0 sm:$0xff] }
  0x44   : > { %v317_v32 = vadd.bf16 %v313_v24, %v297_v20  ;;  %v318_v33 = vadd.bf16 %v313_v24, %v298_v21  ;;  %v325_v34 = vadd.bf16 %v313_v24, %v305_v22  ;;  %v326_v35 = vadd.bf16 %v313_v24, %v306_v23 }
  0x45   : > { %v331_v37 = vmax.bf16 %v948_v36, %v315_v28  ;;  %v332_v38 = vmax.bf16 %v948_v36, %v316_v29  ;;  %v339_v39 = vmax.bf16 %v948_v36, %v323_v30  ;;  %v340_v40 = vmax.bf16 %v948_v36, %v324_v31 }
  0x46   : > { %v333_v42 = vmax.bf16 %v948_v36, %v317_v32  ;;  %v334_v43 = vmax.bf16 %v948_v36, %v318_v33  ;;  %v341_v44 = vmax.bf16 %v948_v36, %v325_v34  ;;  %v342_v45 = vmax.bf16 %v948_v36, %v326_v35 }
  0x47   : > { %v719_v47 = vcombine.low %v331_v37, %v332_v38  ;;  %v723_v48 = vcombine.low %v339_v39, %v340_v40  ;;  %v319_v49 = vadd.bf16 %v313_v24, %v299_v25  ;;  %v320_v50 = vadd.bf16 %v313_v24, %v300_v26 }
  0x48   : > { %v720_v52 = vcombine.low %v333_v42, %v334_v43  ;;  %v724_v53 = vcombine.low %v341_v44, %v342_v45  ;;  %v308_v54 = vmul.bf16 %v1074_v13, %v288_v41  ;;  %v327_v55 = vadd.bf16 %v313_v24, %v307_v27 }
  0x49   : > { %842 = vmatprep.mubr.msk.bf16.mxu0 %vm426_vm0, %v719_v47  ;;  %850 = vmatprep.mubr.msk.bf16.mxu1 %vm426_vm0, %v723_v48  ;;  %v335_v58 = vmax.bf16 %v948_v36, %v319_v49  ;;  %v336_v59 = vmax.bf16 %v948_v36, %v320_v50  ;;  %v301_v60 = vmul.bf16 %v1074_v13, %v281_v46 }
  0x4a   : > { %843 = vmatmul.mubr.msk.bf16.vlgmr.msra.gmra.mrb[0].mxu0 %vm426_vm0, %v720_v52  ;;  %851 = vmatmul.mubr.msk.bf16.vlgmr.msra.gmra.mrb[0].mxu1 %vm426_vm0, %v724_v53  ;;  %v328_v61 = vadd.bf16 %v313_v24, %v308_v54  ;;  %v343_v62 = vmax.bf16 %v948_v36, %v327_v55  ;;  %v302_v63 = vmul.bf16 %v1074_v13, %v282_v51 }
  0x4b   : > { %v721_v0 = vcombine.low %v335_v58, %v336_v59  ;;  %v321_v1 = vadd.bf16 %v313_v24, %v301_v60  ;;  %v309_v2 = vmul.bf16 %v1074_v13, %v289_v56  ;;  %v310_v3 = vmul.bf16 %v1074_v13, %v290_v57 }
  0x4c   : > { %v344_v4 = vmax.bf16 %v948_v36, %v328_v61  ;;  %v322_v5 = vadd.bf16 %v313_v24, %v302_v63 }
  0x4d   : > { %846 = vmatprep.mubr.msk.bf16.mxu0 %vm426_vm0, %v721_v0  ;;  %v337_v6 = vmax.bf16 %v948_v36, %v321_v1  ;;  %v329_v7 = vadd.bf16 %v313_v24, %v309_v2  ;;  %v330_v8 = vadd.bf16 %v313_v24, %v310_v3 }
  0x4e   : > { %v725_v9 = vcombine.low %v343_v62, %v344_v4  ;;  %v338_v10 = vmax.bf16 %v948_v36, %v322_v5 }
  0x4f   : > { %v345_v11 = vmax.bf16 %v948_v36, %v329_v7  ;;  %v346_v12 = vmax.bf16 %v948_v36, %v330_v8 }
  0x50   : > { %854 = vmatprep.mubr.msk.bf16.mxu1 %vm426_vm0, %v725_v9  ;;  %v722_v14 = vcombine.low %v337_v6, %v338_v10 }
  0x51   : > { %v726_v15 = vcombine.low %v345_v11, %v346_v12 }
  0x52   : > { %847 = vmatmul.mubr.msk.bf16.gmra.mrb[4].mxu0 %vm426_vm0, %v722_v14 }
  0x53   : > { %855 = vmatmul.mubr.msk.bf16.gmra.mrb[4].mxu1 %vm426_vm0, %v726_v15 }
 0x11d   : > { %v844_v13 = vpop.f32.mrb[0].mxu0  ;;  %v852_v17 = vpop.f32.mrb[0].mxu1 }
 0x11e   : > { %v485_v18 = vpop.f32.mrb[1].mxu0  ;;  %v517_v19 = vpop.f32.mrb[1].mxu1  ;;  %v494_v22 = vadd.f32 %v844_v13, %v718_v16  ;;  %v526_v23 = vadd.f32 %v852_v17, %v718_v16 }
 0x11f   : > { %v845_v20 = vpop.f32.mrb[2].mxu0  ;;  %v853_v21 = vpop.f32.mrb[2].mxu1  ;;  %v486_v28 = vadd.f32 %v718_v16, %v485_v18  ;;  %v518_v29 = vadd.f32 %v718_v16, %v517_v19 }
 0x120   : > { %v497_v24 = vadd.f32 %v845_v20, %v718_v16  ;;  %v529_v25 = vadd.f32 %v853_v21, %v718_v16  ;;  %v488_v26 = vpop.f32.mrb[3].mxu0  ;;  %v520_v27 = vpop.f32.mrb[3].mxu1 }
 0x121   : > { %v489_v30 = vadd.f32 %v718_v16, %v488_v26  ;;  %v521_v31 = vadd.f32 %v718_v16, %v520_v27 }
 0x122   : > { %v783_v32 = vpack.c.bf16 %v497_v24, %v494_v22  ;;  %v803_v33 = vpack.c.bf16 %v529_v25, %v526_v23 }
 0x123   : > { %v778_v34 = vpack.c.bf16 %v489_v30, %v486_v28  ;;  %v798_v35 = vpack.c.bf16 %v521_v31, %v518_v29 }
 0x124   : > { %815 = vst [vmem:[%s1115_s19 + $0x8] sm:$0xff] %v783_v32   ;;  %819 = vst [vmem:[%s1115_s19 + $0x28] sm:$0xff] %v803_v33  }
 0x125   : > { %779 = vst [vmem:[%s1115_s19] sm:$0xff] %v778_v34   ;;  %818 = vst [vmem:[%s1115_s19 + $0x20] sm:$0xff] %v798_v35   ;;  %v848_v36 = vpop.f32.mrb[4].mxu0 }
 0x126   : > { %v856_v37 = vpop.f32.mrb[4].mxu1  ;;  %v501_v38 = vpop.f32.mrb[5].mxu0  ;;  %v510_v41 = vadd.f32 %v848_v36, %v718_v16 }
 0x127   : > { %v533_v39 = vpop.f32.mrb[5].mxu1  ;;  %v849_v40 = vpop.f32.mrb[6].mxu0  ;;  %v542_v45 = vadd.f32 %v856_v37, %v718_v16  ;;  %v502_v46 = vadd.f32 %v718_v16, %v501_v38 }
 0x128   : > { %v513_v42 = vadd.f32 %v849_v40, %v718_v16  ;;  %v857_v43 = vpop.f32.mrb[6].mxu1  ;;  %v504_v44 = vpop.f32.mrb[7].mxu0  ;;  %v534_v50 = vadd.f32 %v718_v16, %v533_v39 }
 0x129   : > { %v545_v47 = vadd.f32 %v857_v43, %v718_v16  ;;  %v505_v48 = vadd.f32 %v718_v16, %v504_v44  ;;  %v536_v49 = vpop.f32.mrb[7].mxu1 }
 0x12a   : > { %v793_v51 = vpack.c.bf16 %v513_v42, %v510_v41  ;;  %v537_v52 = vadd.f32 %v718_v16, %v536_v49 }
 0x12b   : > { %v813_v53 = vpack.c.bf16 %v545_v47, %v542_v45  ;;  %v788_v54 = vpack.c.bf16 %v505_v48, %v502_v46 }
 0x12c   : > { %817 = vst [vmem:[%s1115_s19 + $0x18] sm:$0xff] %v793_v51   ;;  %v808_v55 = vpack.c.bf16 %v537_v52, %v534_v50 }
 0x12d   : > { %821 = vst [vmem:[%s1115_s19 + $0x38] sm:$0xff] %v813_v53   ;;  %816 = vst [vmem:[%s1115_s19 + $0x10] sm:$0xff] %v788_v54  }
 0x12e   : > { %820 = vst [vmem:[%s1115_s19 + $0x30] sm:$0xff] %v808_v55  }
 0x12f PF: > { %s17_s18 = sadd.s32 1, %s944_s18  }
 0x130   : > { %p14_p13 = scmp.ge.s32.totalorder %s17_s18, 4  }
 0x132   :  { %16 = sbr.rel (!%p14_p13) target bundleno = 2 (0x2), region = 79 }
 0x139   :  { %649 = vsyncpa [#allocation3], 1 }
 0x13a   :  { %651 = vsyncpa [#allocation3 + $0x1], 1 }
 0x13b   :  { %652 = vsyncpa [#allocation5], 1 }

// kernel: residual_block.4
= control target key start
LH: loop header
LB: loop body
LE: loop exit
PB: predicated region body
PF: predicated region fallthrough
CT: control target
= control target key end

     0   :  { %10 = vsyncpa [#allocation3], 0  ;;  %s1862_s0 = inlined_call_operand.vmem [shape: bf16[2,16,8,128], index: 0, kind: input, shape index: {}]   ;;  %s1863_s1 = inlined_call_operand.vmem [shape: bf16[3,128,128], index: 1, kind: input, shape index: {}]   ;;  %s1864_s2 = inlined_call_operand.vmem [shape: f32[1,128], index: 2, kind: input, shape index: {}]   ;;  %s1865_s3 = inlined_call_operand.vmem [shape: f32[2], index: 3, kind: input, shape index: {}]   ;;  %s1866_s4 = inlined_call_operand.vmem [shape: f32[2], index: 4, kind: input, shape index: {}]   ;;  %s1867_s5 = inlined_call_operand.vmem [shape: bf16[2,14,8,128], index: 5, kind: output, shape index: {}]  }
   0x1   :  { %11 = vsyncpa [#allocation5], 0  ;;  %s1469_s18 = smov 0  }
   0x2 LB: > { %s1475_s19 = sadd.s32 4294967295, %s1432_s18   ;;  %p1012_p0 = scmp.ge.s32.totalorder %s1432_s18, 1  ;;  %s1432_s18 = sphi %s1469_s18, %s17_s18  }
   0x3   : > { %p158_p1 = scmp.lt.s32.totalorder %s1432_s18, 3  ;;  %s177_s22 = sshll.u32 %s1865_s3, 4  ;;  %s178_s22 = int_to_ptr.vmem [resolvable:$true] %s177_s22 }
   0x4   : > { %p1868_p3 = scmp.eq.s32.totalorder %s1475_s19, 0  ;;  %s188_s26 = sshll.u32 %s1866_s4, 4  ;;  %s189_s26 = int_to_ptr.vmem [resolvable:$true] %s188_s26 }
   0x5   : > { %p1482_p2 = pnand %p1012_p0, %p158_p1  ;;  %s1388_s28 = scalar_lea.vmem %s178_s22, 16 }
   0x6   : > { %p1389_p6 = scmp.ne.s32.totalorder %s178_s22, %s1388_s28  ;;  %p1396_p10 = scmp.lt.s32.totalorder %s178_s22, %s178_s22 }
   0x7   : > { %s1870_s23 = scalar_select %p1482_p2, 1, 0 }
   0x8   : > { %p1340_p4 = pneg %p1482_p2  ;;  %p1397_p11 = scmp.lt.s32.totalorder %s1388_s28, %s1388_s28 }
   0xa   : > { %p1494_p5 = pnand %p1868_p3, %p1340_p4  ;;  %p1398_p12 = por %p1397_p11, %p1396_p10 }
   0xc   : > { %p1390_p7 = pneg %p1494_p5 }
   0xe   : > { %p1391_p8 = pnand %p1390_p7, %p1389_p6 }
  0x10   : > { %p1392_p9 = pneg %p1391_p8 }
  0x12   : > { %p1399_p13 = pnand %p1398_p12, %p1392_p9 }
  0x14   : > { %1402 = shalt.err (!%p1399_p13)
}
  0x15   : > { %s1434_s29 = smov [#allocation2]   ;;  %s1403_s30 = scalar_lea.vmem %s189_s26, 16 }
  0x16   : > { %1343 = dma.vmem_to_smem (!%p1494_p5), %s178_s22, 16, %s1434_s29, [#allocation3]  }
  0x17   : > { %p1404_p0 = scmp.ne.s32.totalorder %s189_s26, %s1403_s30  ;;  %p1411_p3 = scmp.lt.s32.totalorder %s189_s26, %s189_s26 }
  0x18   : > { %p1412_p2 = scmp.lt.s32.totalorder %s1403_s30, %s1403_s30 }
  0x19   : > { %p1406_p1 = pnand %p1404_p0, %p1390_p7 }
  0x1a   : > { %p1413_p6 = por %p1412_p2, %p1411_p3 }
  0x1b   : > { %p1407_p4 = pneg %p1406_p1 }
  0x1d   : > { %p1414_p8 = pnand %p1413_p6, %p1407_p4 }
  0x1f   : > { %1417 = shalt.err (!%p1414_p8)
}
  0x20   : > { %s1435_s6 = smov [#allocation4]   ;;  %p1872_p9 = scmp.ne.s32.totalorder %s1870_s23, 0 }
  0x21   : > { %1346 = dma.vmem_to_smem (!%p1494_p5), %s189_s26, 16, %s1435_s6, [#allocation5]  }
  0x22   : > { %209 = sbr.rel (%p1872_p9) target bundleno = 384 (0x180), region = 40  ;;  %p1873_p10 = scmp.eq.s32.totalorder (!%p1872_p9), %s1475_s19, 0 }
  0x29   : > { %1423 = dma.done.wait (%p1873_p10), [#allocation3], 16   ;;  %p1874_p11 = pmov %p1873_p10 }
  0x2a   : > { %p1875_p7 = pmov %p1873_p10 }
  0x2b   : > { %1425 = vsyncadd (%p1874_p11), [#allocation3], 4294967280 }
  0x2c   : > { %1427 = dma.done.wait (%p1875_p7), [#allocation5], 16   ;;  %p1876_p2 = pmov %p1875_p7 }
  0x2e   : > { %1429 = vsyncadd (%p1876_p2), [#allocation5], 4294967280 }
  0x2f   : > { %219 = sfence }
  0x30   : > { %v1364_v0 = vld [vmem:[%s1863_s1 + $0x40] sm:$0xff]   ;;  %v1436_v1 = vmov 0.0   ;;  %v1365_v2 = vld [vmem:[%s1863_s1 + $0x48] sm:$0xff]   ;;  %p242_p3 = scmp.lt.s32.totalorder %s1475_s19, 1  ;;  %s1526_s11 = sld [smem:[#allocation2 + %s1475_s19]]  ;;  %vm1437_vm0 = vmmov 0  }
  0x31   : > { %1183 = vmatprep.subr.bf16.mxu0 %v1436_v1  ;;  %1315 = vmatprep.subr.bf16.mxu1 %v1436_v1  ;;  %s1536_s13 = sld [smem:[#allocation4 + %s1475_s19]]  ;;  %v1366_v3 = vld [vmem:[%s1863_s1 + $0x50] sm:$0xff]   ;;  %v1367_v4 = vld [vmem:[%s1863_s1 + $0x58] sm:$0xff]   ;;  %v1368_v5 = vld [vmem:[%s1863_s1 + $0x60] sm:$0xff]   ;;  %v1438_v31 = vmov 0  }
  0x32   : > { %1184 = vmatpush3.bf16.msra.mxu0 %v1364_v0  ;;  %1323 = vmatpush3.bf16.msra.mxu1 %v1364_v0  ;;  %s1533_s12 = scalar_select %p242_p3, %s1475_s19, 1  ;;  %v1369_v10 = vld [vmem:[%s1863_s1 + $0x68] sm:$0xff]   ;;  %v1370_v18 = vld [vmem:[%s1863_s1 + $0x70] sm:$0xff]   ;;  %v1371_v30 = vld [vmem:[%s1863_s1 + $0x78] sm:$0xff]  }
  0x33   : > { %1185 = vmatprep.subr.bf16.mxu0 %v1436_v1  ;;  %1316 = vmatprep.subr.bf16.mxu1 %v1436_v1  ;;  %v1372_v42 = vld [vmem:[%s1863_s1] sm:$0xff]   ;;  %v1374_v56 = vld [vmem:[%s1863_s1 + $0x8] sm:$0xff]  }
  0x34   : > { %1199 = vmatprep.mubr.msk.bf16.mxu0 %vm1437_vm0, %v1436_v1  ;;  %1215 = vmatprep.mubr.msk.bf16.mxu1 %vm1437_vm0, %v1436_v1  ;;  %s1096_s16 = sshll.u32 %s1533_s12, 6  ;;  %v1373_v45 = vld [vmem:[%s1863_s1 + $0x80] sm:$0xff]   ;;  %v1375_v57 = vld [vmem:[%s1863_s1 + $0x88] sm:$0xff]  }
  0x35   : > { %s1547_s21 = scalar_lea.vmem %s1862_s0, %s1096_s16 }
  0x36   : > { %1186 = vmatpush3.bf16.msra.mxu0 %v1365_v2  ;;  %1324 = vmatpush3.bf16.msra.mxu1 %v1365_v2  ;;  %s256_s19 = sshrl.u32 %s1526_s11, 16  ;;  %p255_p5 = scmp.ne.f32.partialorder %s1526_s11, %s1526_s11  ;;  %v276_v6 = vld [vmem:[%s1547_s21 + $0x4] sm:$0xf]  ;;  %v277_v7 = vld [vmem:[%s1547_s21 + $0x8] sm:$0xf] }
  0x37   : > { %1187 = vmatprep.subr.bf16.mxu0 %v1436_v1  ;;  %1317 = vmatprep.subr.bf16.mxu1 %v1436_v1  ;;  %s257_s24 = sand.u32 1, %s256_s19  ;;  %p266_p12 = scmp.ne.f32.partialorder %s1536_s13, %s1536_s13  ;;  %v284_v8 = vld [vmem:[%s1547_s21 + $0x24] sm:$0xf]  ;;  %v285_v9 = vld [vmem:[%s1547_s21 + $0x28] sm:$0xf] }
  0x38   : > { %s258_s25 = sadd.s32 32767, %s257_s24  ;;  %s267_s27 = sshrl.u32 %s1536_s13, 16  ;;  %v278_v11 = vld [vmem:[%s1547_s21 + $0xc] sm:$0xf]  ;;  %v279_v12 = vld [vmem:[%s1547_s21 + $0x10] sm:$0xf] }
  0x39   : > { %s259_s26 = sadd.s32 %s258_s25, %s1526_s11  ;;  %s268_s29 = sand.u32 1, %s267_s27  ;;  %v286_v14 = vld [vmem:[%s1547_s21 + $0x2c] sm:$0xf]  ;;  %v287_v20 = vld [vmem:[%s1547_s21 + $0x30] sm:$0xf] }
  0x3a   : > { %1188 = vmatpush3.bf16.msra.mxu0 %v1366_v3  ;;  %1325 = vmatpush3.bf16.msra.mxu1 %v1366_v3  ;;  %s260_s28 = sand.u32 4294901760, %s259_s26  ;;  %s269_s7 = sadd.s32 32767, %s268_s29  ;;  %v280_v39 = vld [vmem:[%s1547_s21 + $0x14] sm:$0xf]  ;;  %v281_v44 = vld [vmem:[%s1547_s21 + $0x18] sm:$0xf] }
  0x3b   : > { %1189 = vmatprep.subr.bf16.mxu0 %v1436_v1  ;;  %1318 = vmatprep.subr.bf16.mxu1 %v1436_v1  ;;  %s1878_s28 = smov (%p255_p5, %s260_s28), 2143289344  ;;  %s270_s9 = sadd.s32 %s269_s7, %s1536_s13  ;;  %v288_v46 = vld [vmem:[%s1547_s21 + $0x34] sm:$0xf]  ;;  %v289_v47 = vld [vmem:[%s1547_s21 + $0x38] sm:$0xf] }
  0x3c   : > { %s263_s8 = sshrl.u32 %s1878_s28, 16  ;;  %s271_s10 = sand.u32 4294901760, %s270_s9  ;;  %v290_v58 = vld [vmem:[%s1547_s21 + $0x3c] sm:$0xf]  ;;  %v283_v3 = vld [vmem:[%s1547_s21 + $0x20] sm:$0xf] }
  0x3d   : > { %s291_s11 = sshll.u32 %s263_s8, 16  ;;  %s1880_s10 = smov (%p266_p12, %s271_s10), 2143289344  ;;  %v282_v2 = vld [vmem:[%s1547_s21 + $0x1c] sm:$0xf] }
  0x3e   : > { %1190 = vmatpush3.bf16.msra.mxu0 %v1367_v4  ;;  %1326 = vmatpush3.bf16.msra.mxu1 %v1367_v4  ;;  %s292_s16 = sor.u32 %s291_s11, %s263_s8  ;;  %s274_s17 = sshrl.u32 %s1880_s10, 16 }
  0x3f   : > { %1191 = vmatprep.subr.bf16.mxu0 %v1436_v1  ;;  %1319 = vmatprep.subr.bf16.mxu1 %v1436_v1  ;;  %v1581_v13 = vstv %s292_s16  ;;  %s311_s20 = sshll.u32 %s274_s17, 16  ;;  %s1331_s11 = smul.u32 56, %s1533_s12 }
  0x40   : > { %v296_v15 = vmul.bf16 %v1581_v13, %v276_v6  ;;  %v297_v16 = vmul.bf16 %v1581_v13, %v277_v7  ;;  %v304_v17 = vmul.bf16 %v1581_v13, %v284_v8  ;;  %s312_s22 = sor.u32 %s311_s20, %s274_s17  ;;  %v305_v19 = vmul.bf16 %v1581_v13, %v285_v9  ;;  %v1377_v6 = vld [vmem:[%s1863_s1 + $0x90] sm:$0xff]  }
  0x41   : > { %v1594_v21 = vstv %s312_s22  ;;  %v298_v22 = vmul.bf16 %v1581_v13, %v278_v11  ;;  %v299_v23 = vmul.bf16 %v1581_v13, %v279_v12  ;;  %v306_v27 = vmul.bf16 %v1581_v13, %v286_v14  ;;  %s1832_s16 = scalar_lea.vmem %s1867_s5, %s1331_s11 }
  0x42   : > { %1192 = vmatpush3.bf16.msra.mxu0 %v1368_v5  ;;  %1327 = vmatpush3.bf16.msra.mxu1 %v1368_v5  ;;  %v316_v24 = vadd.bf16 %v1594_v21, %v296_v15  ;;  %v317_v25 = vadd.bf16 %v1594_v21, %v297_v16  ;;  %v324_v26 = vadd.bf16 %v1594_v21, %v304_v17  ;;  %v1376_v5 = vld [vmem:[%s1863_s1 + $0x10] sm:$0xff]   ;;  %v1378_v16 = vld [vmem:[%s1863_s1 + $0x18] sm:$0xff]  }
  0x43   : > { %1193 = vmatprep.subr.bf16.mxu0 %v1436_v1  ;;  %1320 = vmatprep.subr.bf16.mxu1 %v1436_v1  ;;  %v325_v28 = vadd.bf16 %v1594_v21, %v305_v19  ;;  %v307_v29 = vmul.bf16 %v1581_v13, %v287_v20  ;;  %v318_v36 = vadd.bf16 %v1594_v21, %v298_v22  ;;  %v1379_v17 = vld [vmem:[%s1863_s1 + $0x98] sm:$0xff]  }
  0x44   : > { %v1608_v32 = vmax.bf16 %v1438_v31, %v316_v24  ;;  %v1611_v33 = vmax.bf16 %v1438_v31, %v317_v25  ;;  %v1616_v34 = vmax.bf16 %v1438_v31, %v324_v26  ;;  %v319_v37 = vadd.bf16 %v1594_v21, %v299_v23  ;;  %v275_v24 = vld [vmem:[%s1547_s21] sm:$0xf] }
  0x45   : > { %v1619_v35 = vmax.bf16 %v1438_v31, %v325_v28  ;;  %v326_v38 = vadd.bf16 %v1594_v21, %v306_v27  ;;  %v327_v43 = vadd.bf16 %v1594_v21, %v307_v29  ;;  %v300_v48 = vmul.bf16 %v1581_v13, %v280_v39  ;;  %v1380_v25 = vld [vmem:[%s1863_s1 + $0x20] sm:$0xff]   ;;  %v1385_v39 = vld [vmem:[%s1863_s1 + $0xb0] sm:$0xff]  }
  0x46   : > { %1194 = vmatpush3.bf16.msra.mxu0 %v1369_v10  ;;  %1328 = vmatpush3.bf16.msra.mxu1 %v1369_v10  ;;  %v1038_v40 = vcombine.low %v1608_v32, %v1611_v33  ;;  %v1643_v49 = vmax.bf16 %v1438_v31, %v318_v36  ;;  %v1646_v50 = vmax.bf16 %v1438_v31, %v319_v37  ;;  %v1381_v26 = vld [vmem:[%s1863_s1 + $0xa0] sm:$0xff]   ;;  %v1383_v36 = vld [vmem:[%s1863_s1 + $0xa8] sm:$0xff]  }
  0x47   : > { %1195 = vmatprep.subr.bf16.mxu0 %v1436_v1  ;;  %1321 = vmatprep.subr.bf16.mxu1 %v1436_v1  ;;  %v1042_v41 = vcombine.low %v1616_v34, %v1619_v35  ;;  %v1649_v51 = vmax.bf16 %v1438_v31, %v326_v38  ;;  %v301_v52 = vmul.bf16 %v1581_v13, %v281_v44  ;;  %v1384_v38 = vld [vmem:[%s1863_s1 + $0x30] sm:$0xff]  }
  0x48   : > { %v1653_v53 = vmax.bf16 %v1438_v31, %v327_v43  ;;  %v308_v54 = vmul.bf16 %v1581_v13, %v288_v46  ;;  %v309_v55 = vmul.bf16 %v1581_v13, %v289_v47  ;;  %v1039_v59 = vcombine.low %v1643_v49, %v1646_v50 }
  0x49   : > { %v320_v60 = vadd.bf16 %v1594_v21, %v300_v48  ;;  %v321_v61 = vadd.bf16 %v1594_v21, %v301_v52  ;;  %v310_v4 = vmul.bf16 %v1581_v13, %v290_v58  ;;  %v302_v10 = vmul.bf16 %v1581_v13, %v282_v2 }
  0x4a   : > { %1196 = vmatpush3.bf16.msra.mxu0 %v1370_v18  ;;  %1329 = vmatpush3.bf16.msra.mxu1 %v1370_v18  ;;  %v1043_v62 = vcombine.low %v1649_v51, %v1653_v53  ;;  %v328_v63 = vadd.bf16 %v1594_v21, %v308_v54  ;;  %v329_v0 = vadd.bf16 %v1594_v21, %v309_v55 }
  0x4b   : > { %1197 = vmatprep.subr.bf16.mxu0 %v1436_v1  ;;  %1322 = vmatprep.subr.bf16.mxu1 %v1436_v1  ;;  %v330_v7 = vadd.bf16 %v1594_v21, %v310_v4  ;;  %v1691_v8 = vmax.bf16 %v1438_v31, %v320_v60  ;;  %v1694_v9 = vmax.bf16 %v1438_v31, %v321_v61 }
  0x4c   : > { %v303_v11 = vmul.bf16 %v1581_v13, %v283_v3  ;;  %v1699_v12 = vmax.bf16 %v1438_v31, %v328_v63  ;;  %v1702_v14 = vmax.bf16 %v1438_v31, %v329_v0  ;;  %v322_v22 = vadd.bf16 %v1594_v21, %v302_v10 }
  0x4d   : > { %v1705_v15 = vmax.bf16 %v1438_v31, %v330_v7  ;;  %v1040_v19 = vcombine.low %v1691_v8, %v1694_v9  ;;  %v295_v27 = vmul.bf16 %v1581_v13, %v275_v24  ;;  %v1055_v43 = vcombine.low %v1646_v50, %v1691_v8 }
  0x4e   : > { %1198 = vmatpush3.bf16.msra.mxu0 %v1371_v30  ;;  %1330 = vmatpush3.bf16.msra.mxu1 %v1371_v30  ;;  %v1044_v20 = vcombine.low %v1699_v12, %v1702_v14  ;;  %v323_v23 = vadd.bf16 %v1594_v21, %v303_v11  ;;  %v338_v28 = vmax.bf16 %v1438_v31, %v322_v22  ;;  %v1382_v30 = vld [vmem:[%s1863_s1 + $0x28] sm:$0xff]  }
  0x4f   : > { %1227 = vmatprep.subr.bf16.mxu1 %v1436_v1  ;;  %1271 = vmatprep.subr.bf16.mxu0 %v1436_v1  ;;  %v1084_v18 = vcombine.low %v1702_v14, %v1705_v15  ;;  %v315_v13 = vadd.bf16 %v1594_v21, %v295_v27  ;;  %v1386_v21 = vld [vmem:[%s1863_s1 + $0x38] sm:$0xff]   ;;  %v1058_v44 = vcombine.low %v1619_v35, %v1649_v51 }
  0x50   : > { %v339_v29 = vmax.bf16 %v1438_v31, %v323_v23 }
  0x51   : > { %1200 = vmatmul.mubr.bf16.vlgmr.msra.gmra.mrb[0].mxu0 %v1038_v40  ;;  %1216 = vmatmul.mubr.bf16.vlgmr.msra.gmra.mrb[0].mxu1 %v1042_v41  ;;  %v331_v40 = vmax.bf16 %v1438_v31, %v315_v13  ;;  %v1387_v41 = vld [vmem:[%s1863_s1 + $0xb8] sm:$0xff]  }
  0x52   : > { %1228 = vmatpush3.bf16.msra.mxu1 %v1372_v42  ;;  %1272 = vmatpush3.bf16.msra.mxu0 %v1373_v45  ;;  %v1041_v37 = vcombine.low %v338_v28, %v339_v29  ;;  %v1054_v42 = vcombine.low %v1611_v33, %v1643_v49  ;;  %v1057_v33 = vcombine.low %v339_v29, %v1616_v34 }
  0x53   : > { %1229 = vmatprep.subr.bf16.mxu1 %v1436_v1  ;;  %1273 = vmatprep.subr.bf16.mxu0 %v1436_v1  ;;  %v1053_v31 = vcombine.low %v331_v40, %v1608_v32  ;;  %v1056_v32 = vcombine.low %v1694_v9, %v338_v28  ;;  %v1059_v34 = vcombine.low %v1653_v53, %v1699_v12 }
  0x54   : > { %1203 = vmatprep.mubr.msk.bf16.mxu0 %vm1437_vm0, %v1436_v1  ;;  %1219 = vmatprep.mubr.msk.bf16.mxu1 %vm1437_vm0, %v1436_v1 }
  0x56   : > { %1230 = vmatpush3.bf16.msra.mxu1 %v1374_v56  ;;  %1274 = vmatpush3.bf16.msra.mxu0 %v1375_v57 }
  0x57   : > { %1231 = vmatprep.subr.bf16.mxu1 %v1436_v1  ;;  %1275 = vmatprep.subr.bf16.mxu0 %v1436_v1 }
  0x59   : > { %1204 = vmatmul.mubr.bf16.gmra.mrb[4].mxu0 %v1039_v59  ;;  %1220 = vmatmul.mubr.bf16.gmra.mrb[4].mxu1 %v1043_v62 }
  0x5a   : > { %1232 = vmatpush3.bf16.msra.mxu1 %v1376_v5  ;;  %1276 = vmatpush3.bf16.msra.mxu0 %v1377_v6 }
  0x5b   : > { %1233 = vmatprep.subr.bf16.mxu1 %v1436_v1  ;;  %1277 = vmatprep.subr.bf16.mxu0 %v1436_v1 }
  0x5c   : > { %1207 = vmatprep.mubr.msk.bf16.mxu0 %vm1437_vm0, %v1436_v1  ;;  %1223 = vmatprep.mubr.msk.bf16.mxu1 %vm1437_vm0, %v1436_v1 }
  0x5e   : > { %1234 = vmatpush3.bf16.msra.mxu1 %v1378_v16  ;;  %1278 = vmatpush3.bf16.msra.mxu0 %v1379_v17 }
  0x5f   : > { %1235 = vmatprep.subr.bf16.mxu1 %v1436_v1  ;;  %1279 = vmatprep.subr.bf16.mxu0 %v1436_v1 }
  0x61   : > { %1208 = vmatmul.mubr.bf16.gmra.mrb[8].mxu0 %v1040_v19  ;;  %1224 = vmatmul.mubr.bf16.gmra.mrb[8].mxu1 %v1044_v20  ;;  %v1824_v20 = vld [vmem:[%s1864_s2] ss:$0 sm:$0xff] }
  0x62   : > { %1236 = vmatpush3.bf16.msra.mxu1 %v1380_v25  ;;  %1280 = vmatpush3.bf16.msra.mxu0 %v1381_v26 }
  0x63   : > { %1237 = vmatprep.subr.bf16.mxu1 %v1436_v1  ;;  %1281 = vmatprep.subr.bf16.mxu0 %v1436_v1 }
  0x64   : > { %1211 = vmatprep.mubr.msk.bf16.mxu0 %vm1437_vm0, %v1436_v1  ;;  %1243 = vmatprep.mubr.msk.bf16.mxu1 %vm1437_vm0, %v1436_v1 }
  0x66   : > { %1238 = vmatpush3.bf16.msra.mxu1 %v1382_v30  ;;  %1282 = vmatpush3.bf16.msra.mxu0 %v1383_v36 }
  0x67   : > { %1239 = vmatprep.subr.bf16.mxu1 %v1436_v1  ;;  %1283 = vmatprep.subr.bf16.mxu0 %v1436_v1 }
  0x69   : > { %1212 = vmatmul.mubr.bf16.gmra.mrb[12].mxu0 %v1041_v37 }
  0x6a   : > { %1240 = vmatpush3.bf16.msra.mxu1 %v1384_v38  ;;  %1284 = vmatpush3.bf16.msra.mxu0 %v1385_v39 }
  0x6b   : > { %1241 = vmatprep.subr.bf16.mxu1 %v1436_v1  ;;  %1285 = vmatprep.subr.bf16.mxu0 %v1436_v1 }
  0x6c   : > { %1287 = vmatprep.mubr.msk.bf16.mxu0 %vm1437_vm0, %v1436_v1 }
  0x6e   : > { %1242 = vmatpush3.bf16.msra.mxu1 %v1386_v21  ;;  %1286 = vmatpush3.bf16.msra.mxu0 %v1387_v41 }
  0x71   : > { %1244 = vmatmul.mubr.bf16.vlgmr.msra.gmra.mrb[12].mxu1 %v1053_v31  ;;  %1288 = vmatmul.mubr.bf16.vlgmr.msra.gmra.mrb[16].mxu0 %v1054_v42 }
  0x72   : > { %1247 = vmatprep.mubr.msk.bf16.mxu1 %vm1437_vm0, %v1436_v1  ;;  %1291 = vmatprep.mubr.msk.bf16.mxu0 %vm1437_vm0, %v1436_v1 }
  0x79   : > { %1248 = vmatmul.mubr.bf16.gmra.mrb[16].mxu1 %v1054_v42  ;;  %1292 = vmatmul.mubr.bf16.gmra.mrb[20].mxu0 %v1055_v43 }
  0x7a   : > { %1251 = vmatprep.mubr.msk.bf16.mxu1 %vm1437_vm0, %v1436_v1  ;;  %1295 = vmatprep.mubr.msk.bf16.mxu0 %vm1437_vm0, %v1436_v1 }
  0x81   : > { %1252 = vmatmul.mubr.bf16.gmra.mrb[20].mxu1 %v1055_v43  ;;  %1296 = vmatmul.mubr.bf16.gmra.mrb[24].mxu0 %v1056_v32 }
  0x82   : > { %1255 = vmatprep.mubr.msk.bf16.mxu1 %vm1437_vm0, %v1436_v1  ;;  %1299 = vmatprep.mubr.msk.bf16.mxu0 %vm1437_vm0, %v1436_v1 }
  0x89   : > { %1256 = vmatmul.mubr.bf16.gmra.mrb[24].mxu1 %v1056_v32  ;;  %1300 = vmatmul.mubr.bf16.gmra.mrb[28].mxu0 %v1057_v33 }
  0x8a   : > { %1259 = vmatprep.mubr.msk.bf16.mxu1 %vm1437_vm0, %v1436_v1  ;;  %1303 = vmatprep.mubr.msk.bf16.mxu0 %vm1437_vm0, %v1436_v1 }
  0x91   : > { %1260 = vmatmul.mubr.bf16.gmra.mrb[28].mxu1 %v1057_v33  ;;  %1304 = vmatmul.mubr.bf16.gmra.mrb[32].mxu0 %v1058_v44 }
  0x92   : > { %1263 = vmatprep.mubr.msk.bf16.mxu1 %vm1437_vm0, %v1436_v1  ;;  %1307 = vmatprep.mubr.msk.bf16.mxu0 %vm1437_vm0, %v1436_v1 }
  0x99   : > { %1264 = vmatmul.mubr.bf16.gmra.mrb[32].mxu1 %v1058_v44  ;;  %1308 = vmatmul.mubr.bf16.gmra.mrb[36].mxu0 %v1059_v34 }
  0x9a   : > { %1267 = vmatprep.mubr.msk.bf16.mxu1 %vm1437_vm0, %v1436_v1  ;;  %1311 = vmatprep.mubr.msk.bf16.mxu0 %vm1437_vm0, %v1436_v1 }
  0xa1   : > { %1268 = vmatmul.mubr.bf16.gmra.mrb[36].mxu1 %v1059_v34  ;;  %1312 = vmatmul.mubr.bf16.gmra.mrb[40].mxu0 %v1084_v18 }
 0x124   : > { %v504_v35 = vpop.f32.mrb[0].mxu0  ;;  %v1809_v45 = vpop.f32.mrb[0].mxu1 }
 0x125   : > { %v1201_v46 = vpop.f32.mrb[1].mxu0  ;;  %v1217_v47 = vpop.f32.mrb[1].mxu1 }
 0x126   : > { %v507_v48 = vpop.f32.mrb[2].mxu0  ;;  %v1811_v49 = vpop.f32.mrb[2].mxu1 }
 0x127   : > { %v1202_v50 = vpop.f32.mrb[3].mxu0  ;;  %v1218_v51 = vpop.f32.mrb[3].mxu1 }
 0x12c   : > { %v512_v52 = vpop.f32.mrb[4].mxu0  ;;  %v1813_v53 = vpop.f32.mrb[4].mxu1 }
 0x12d   : > { %v1205_v54 = vpop.f32.mrb[5].mxu0  ;;  %v1221_v1 = vpop.f32.mrb[5].mxu1 }
 0x12e   : > { %v515_v55 = vpop.f32.mrb[6].mxu0  ;;  %v1815_v56 = vpop.f32.mrb[6].mxu1 }
 0x12f   : > { %v1206_v57 = vpop.f32.mrb[7].mxu0  ;;  %v1222_v58 = vpop.f32.mrb[7].mxu1 }
 0x134   : > { %v520_v59 = vpop.f32.mrb[8].mxu0  ;;  %v1817_v60 = vpop.f32.mrb[8].mxu1 }
 0x135   : > { %v1209_v61 = vpop.f32.mrb[9].mxu0  ;;  %v1225_v62 = vpop.f32.mrb[9].mxu1 }
 0x136   : > { %v523_v63 = vpop.f32.mrb[10].mxu0  ;;  %v1819_v0 = vpop.f32.mrb[10].mxu1 }
 0x137   : > { %v1210_v2 = vpop.f32.mrb[11].mxu0  ;;  %v1226_v3 = vpop.f32.mrb[11].mxu1 }
 0x13c   : > { %v528_v4 = vpop.f32.mrb[12].mxu0 }
 0x13d   : > { %v1213_v5 = vpop.f32.mrb[13].mxu0 }
 0x13e   : > { %v531_v6 = vpop.f32.mrb[14].mxu0 }
 0x13f   : > { %v1214_v7 = vpop.f32.mrb[15].mxu0 }
 0x144   : > { %v657_v8 = vpop.f32.mrb[12].mxu1  ;;  %v815_v9 = vpop.f32.mrb[16].mxu0 }
 0x145   : > { %v658_v10 = vadd.f32 %v657_v8, %v504_v35  ;;  %v1245_v11 = vpop.f32.mrb[13].mxu1  ;;  %v1289_v12 = vpop.f32.mrb[17].mxu0 }
 0x146   : > { %v660_v14 = vpop.f32.mrb[14].mxu1  ;;  %v818_v15 = vpop.f32.mrb[18].mxu0 }
 0x147   : > { %v870_v16 = vadd.f32 %v815_v9, %v658_v10  ;;  %v661_v17 = vadd.f32 %v660_v14, %v507_v48  ;;  %v1246_v18 = vpop.f32.mrb[15].mxu1  ;;  %v1290_v19 = vpop.f32.mrb[19].mxu0 }
 0x149   : > { %v871_v22 = vadd.f32 %v818_v15, %v661_v17  ;;  %v891_v23 = vadd.f32 %v1824_v20, %v870_v16 }
 0x14b   : > { %v892_v24 = vadd.f32 %v1824_v20, %v871_v22 }
 0x14c   : > { %v665_v25 = vpop.f32.mrb[16].mxu1  ;;  %v823_v26 = vpop.f32.mrb[20].mxu0 }
 0x14d   : > { %v1100_v27 = vpack.c.bf16 %v892_v24, %v891_v23  ;;  %v666_v28 = vadd.f32 %v665_v25, %v512_v52  ;;  %v1249_v29 = vpop.f32.mrb[17].mxu1  ;;  %v1293_v30 = vpop.f32.mrb[21].mxu0 }
 0x14e   : > { %v668_v36 = vpop.f32.mrb[18].mxu1  ;;  %v826_v13 = vpop.f32.mrb[22].mxu0 }
 0x14f   : > { %1101 = vst [vmem:[%s1832_s16] sm:$0xff] %v1100_v27   ;;  %v872_v37 = vadd.f32 %v823_v26, %v666_v28  ;;  %v669_v38 = vadd.f32 %v668_v36, %v515_v55  ;;  %v1250_v39 = vpop.f32.mrb[19].mxu1  ;;  %v1294_v40 = vpop.f32.mrb[23].mxu0 }
 0x151   : > { %v873_v21 = vadd.f32 %v826_v13, %v669_v38  ;;  %v893_v41 = vadd.f32 %v1824_v20, %v872_v37 }
 0x153   : > { %v894_v31 = vadd.f32 %v1824_v20, %v873_v21 }
 0x154   : > { %v673_v42 = vpop.f32.mrb[20].mxu1  ;;  %v831_v43 = vpop.f32.mrb[24].mxu0 }
 0x155   : > { %v1105_v32 = vpack.c.bf16 %v894_v31, %v893_v41  ;;  %v674_v33 = vadd.f32 %v673_v42, %v520_v59  ;;  %v1253_v44 = vpop.f32.mrb[21].mxu1  ;;  %v1297_v34 = vpop.f32.mrb[25].mxu0 }
 0x156   : > { %v676_v35 = vpop.f32.mrb[22].mxu1  ;;  %v834_v46 = vpop.f32.mrb[26].mxu0 }
 0x157   : > { %1132 = vst [vmem:[%s1832_s16 + $0x8] sm:$0xff] %v1105_v32   ;;  %v874_v47 = vadd.f32 %v831_v43, %v674_v33  ;;  %v677_v48 = vadd.f32 %v676_v35, %v523_v63  ;;  %v1254_v50 = vpop.f32.mrb[23].mxu1  ;;  %v1298_v51 = vpop.f32.mrb[27].mxu0 }
 0x159   : > { %v875_v52 = vadd.f32 %v834_v46, %v677_v48  ;;  %v895_v54 = vadd.f32 %v1824_v20, %v874_v47 }
 0x15b   : > { %v896_v1 = vadd.f32 %v1824_v20, %v875_v52 }
 0x15c   : > { %v681_v55 = vpop.f32.mrb[24].mxu1  ;;  %v839_v57 = vpop.f32.mrb[28].mxu0 }
 0x15d   : > { %v1110_v58 = vpack.c.bf16 %v896_v1, %v895_v54  ;;  %v682_v61 = vadd.f32 %v681_v55, %v528_v4  ;;  %v1257_v59 = vpop.f32.mrb[25].mxu1  ;;  %v1301_v62 = vpop.f32.mrb[29].mxu0 }
 0x15e   : > { %v684_v2 = vpop.f32.mrb[26].mxu1  ;;  %v842_v3 = vpop.f32.mrb[30].mxu0 }
 0x15f   : > { %1133 = vst [vmem:[%s1832_s16 + $0x10] sm:$0xff] %v1110_v58   ;;  %v876_v5 = vadd.f32 %v839_v57, %v682_v61  ;;  %v685_v7 = vadd.f32 %v684_v2, %v531_v6  ;;  %v1258_v63 = vpop.f32.mrb[27].mxu1  ;;  %v1302_v8 = vpop.f32.mrb[31].mxu0 }
 0x161   : > { %v877_v9 = vadd.f32 %v842_v3, %v685_v7  ;;  %v897_v10 = vadd.f32 %v1824_v20, %v876_v5 }
 0x163   : > { %v898_v11 = vadd.f32 %v1824_v20, %v877_v9 }
 0x164   : > { %v689_v12 = vpop.f32.mrb[28].mxu1  ;;  %v847_v14 = vpop.f32.mrb[32].mxu0 }
 0x165   : > { %v1115_v15 = vpack.c.bf16 %v898_v11, %v897_v10  ;;  %v690_v4 = vadd.f32 %v689_v12, %v1809_v45  ;;  %v1261_v16 = vpop.f32.mrb[29].mxu1  ;;  %v1305_v17 = vpop.f32.mrb[33].mxu0 }
 0x166   : > { %v692_v18 = vpop.f32.mrb[30].mxu1  ;;  %v850_v19 = vpop.f32.mrb[34].mxu0 }
 0x167   : > { %1134 = vst [vmem:[%s1832_s16 + $0x18] sm:$0xff] %v1115_v15   ;;  %v878_v22 = vadd.f32 %v847_v14, %v690_v4  ;;  %v693_v6 = vadd.f32 %v692_v18, %v1811_v49  ;;  %v1262_v23 = vpop.f32.mrb[31].mxu1  ;;  %v1306_v24 = vpop.f32.mrb[35].mxu0 }
 0x169   : > { %v879_v25 = vadd.f32 %v850_v19, %v693_v6  ;;  %v899_v26 = vadd.f32 %v1824_v20, %v878_v22 }
 0x16b   : > { %v900_v27 = vadd.f32 %v1824_v20, %v879_v25 }
 0x16c   : > { %v697_v28 = vpop.f32.mrb[32].mxu1  ;;  %v855_v29 = vpop.f32.mrb[36].mxu0 }
 0x16d   : > { %v1120_v30 = vpack.c.bf16 %v900_v27, %v899_v26  ;;  %v698_v45 = vadd.f32 %v697_v28, %v1813_v53  ;;  %v1265_v36 = vpop.f32.mrb[33].mxu1  ;;  %v1309_v13 = vpop.f32.mrb[37].mxu0 }
 0x16e   : > { %v700_v37 = vpop.f32.mrb[34].mxu1  ;;  %v858_v38 = vpop.f32.mrb[38].mxu0 }
 0x16f   : > { %1135 = vst [vmem:[%s1832_s16 + $0x20] sm:$0xff] %v1120_v30   ;;  %v880_v39 = vadd.f32 %v855_v29, %v698_v45  ;;  %v701_v49 = vadd.f32 %v700_v37, %v1815_v56  ;;  %v1266_v40 = vpop.f32.mrb[35].mxu1  ;;  %v1310_v21 = vpop.f32.mrb[39].mxu0 }
 0x171   : > { %v881_v41 = vadd.f32 %v858_v38, %v701_v49  ;;  %v901_v31 = vadd.f32 %v1824_v20, %v880_v39 }
 0x173   : > { %v902_v42 = vadd.f32 %v1824_v20, %v881_v41 }
 0x174   : > { %v705_v43 = vpop.f32.mrb[36].mxu1  ;;  %v863_v32 = vpop.f32.mrb[40].mxu0 }
 0x175   : > { %v1125_v53 = vpack.c.bf16 %v902_v42, %v901_v31  ;;  %v706_v33 = vadd.f32 %v705_v43, %v1817_v60  ;;  %v1269_v44 = vpop.f32.mrb[37].mxu1  ;;  %v1313_v34 = vpop.f32.mrb[41].mxu0 }
 0x176   : > { %v708_v35 = vpop.f32.mrb[38].mxu1  ;;  %v866_v46 = vpop.f32.mrb[42].mxu0 }
 0x177   : > { %1136 = vst [vmem:[%s1832_s16 + $0x28] sm:$0xff] %v1125_v53   ;;  %v882_v47 = vadd.f32 %v863_v32, %v706_v33  ;;  %v709_v56 = vadd.f32 %v708_v35, %v1819_v0  ;;  %v1270_v48 = vpop.f32.mrb[39].mxu1  ;;  %v1314_v50 = vpop.f32.mrb[43].mxu0 }
 0x179   : > { %v883_v51 = vadd.f32 %v866_v46, %v709_v56  ;;  %v903_v52 = vadd.f32 %v1824_v20, %v882_v47 }
 0x17b   : > { %v904_v54 = vadd.f32 %v1824_v20, %v883_v51 }
 0x17d   : > { %v1130_v1 = vpack.c.bf16 %v904_v54, %v903_v52 }
 0x17f   : > { %1137 = vst [vmem:[%s1832_s16 + $0x30] sm:$0xff] %v1130_v1  }
 0x180 PF: > { %s17_s18 = sadd.s32 1, %s1432_s18  }
 0x181   : > { %p14_p13 = scmp.ge.s32.totalorder %s17_s18, 4  }
 0x183   :  { %16 = sbr.rel (!%p14_p13) target bundleno = 2 (0x2), region = 81 }
 0x18a   :  { %954 = vsyncpa [#allocation3], 1 }
 0x18b   :  { %956 = vsyncpa [#allocation3 + $0x1], 1 }
 0x18c   :  { %957 = vsyncpa [#allocation5], 1 }

// kernel: residual_block.5
= control target key start
LH: loop header
LB: loop body
LE: loop exit
PB: predicated region body
PF: predicated region fallthrough
CT: control target
= control target key end

     0   :  { %12 = vsyncpa [#allocation3], 0  ;;  %s1747_s0 = inlined_call_operand.vmem [shape: bf16[2,16,8,128], index: 0, kind: input, shape index: {}]   ;;  %s1748_s1 = inlined_call_operand.vmem [shape: bf16[2,16,8,64], index: 1, kind: input, shape index: {}]   ;;  %s1749_s2 = inlined_call_operand.vmem [shape: bf16[128,128], index: 2, kind: input, shape index: {}]   ;;  %s1750_s3 = inlined_call_operand.vmem [shape: bf16[64,128], index: 3, kind: input, shape index: {}]   ;;  %s1751_s4 = inlined_call_operand.vmem [shape: f32[1,128], index: 4, kind: input, shape index: {}]   ;;  %s1752_s5 = inlined_call_operand.vmem [shape: f32[2], index: 5, kind: input, shape index: {}]   ;;  %s1753_s6 = inlined_call_operand.vmem [shape: f32[2], index: 6, kind: input, shape index: {}]   ;;  %s1754_s7 = inlined_call_operand.vmem [shape: f32[2,16,8,128], index: 7, kind: output, shape index: {}]  }
   0x1   :  { %13 = vsyncpa [#allocation5], 0  ;;  %s1413_s24 = smov 0  }
   0x2 LB: > { %s1419_s25 = sadd.s32 4294967295, %s1366_s24   ;;  %p1099_p0 = scmp.ge.s32.totalorder %s1366_s24, 1  ;;  %s1366_s24 = sphi %s1413_s24, %s19_s24  }
   0x3   : > { %p207_p1 = scmp.lt.s32.totalorder %s1366_s24, 3  ;;  %s229_s28 = sshll.u32 %s1752_s5, 4  ;;  %s230_s28 = int_to_ptr.vmem [resolvable:$true] %s229_s28 }
   0x4   : > { %p1755_p3 = scmp.eq.s32.totalorder %s1419_s25, 0  ;;  %s240_s9 = sshll.u32 %s1753_s6, 4  ;;  %s241_s9 = int_to_ptr.vmem [resolvable:$true] %s240_s9 }
   0x5   : > { %p1426_p2 = pnand %p1099_p0, %p207_p1  ;;  %s1322_s11 = scalar_lea.vmem %s230_s28, 16 }
   0x6   : > { %p1323_p6 = scmp.ne.s32.totalorder %s230_s28, %s1322_s11  ;;  %p1330_p10 = scmp.lt.s32.totalorder %s230_s28, %s230_s28 }
   0x7   : > { %s1757_s29 = scalar_select %p1426_p2, 1, 0 }
   0x8   : > { %p1278_p4 = pneg %p1426_p2  ;;  %p1331_p11 = scmp.lt.s32.totalorder %s1322_s11, %s1322_s11 }
   0xa   : > { %p1438_p5 = pnand %p1755_p3, %p1278_p4  ;;  %p1332_p12 = por %p1331_p11, %p1330_p10 }
   0xc   : > { %p1324_p7 = pneg %p1438_p5 }
   0xe   : > { %p1325_p8 = pnand %p1324_p7, %p1323_p6 }
  0x10   : > { %p1326_p9 = pneg %p1325_p8 }
  0x12   : > { %p1333_p13 = pnand %p1332_p12, %p1326_p9 }
  0x14   : > { %1336 = shalt.err (!%p1333_p13)
}
  0x15   : > { %s1368_s12 = smov [#allocation2]   ;;  %s1337_s13 = scalar_lea.vmem %s241_s9, 16 }
  0x16   : > { %1281 = dma.vmem_to_smem (!%p1438_p5), %s230_s28, 16, %s1368_s12, [#allocation3]  }
  0x17   : > { %p1338_p0 = scmp.ne.s32.totalorder %s241_s9, %s1337_s13  ;;  %p1345_p3 = scmp.lt.s32.totalorder %s241_s9, %s241_s9 }
  0x18   : > { %p1346_p2 = scmp.lt.s32.totalorder %s1337_s13, %s1337_s13 }
  0x19   : > { %p1340_p1 = pnand %p1338_p0, %p1324_p7 }
  0x1a   : > { %p1347_p6 = por %p1346_p2, %p1345_p3 }
  0x1b   : > { %p1341_p4 = pneg %p1340_p1 }
  0x1d   : > { %p1348_p8 = pnand %p1347_p6, %p1341_p4 }
  0x1f   : > { %1351 = shalt.err (!%p1348_p8)
}
  0x20   : > { %s1369_s14 = smov [#allocation4]   ;;  %p1759_p9 = scmp.ne.s32.totalorder %s1757_s29, 0 }
  0x21   : > { %1284 = dma.vmem_to_smem (!%p1438_p5), %s241_s9, 16, %s1369_s14, [#allocation5]  }
  0x22   : > { %269 = sbr.rel (%p1759_p9) target bundleno = 318 (0x13e), region = 48  ;;  %p1760_p10 = scmp.eq.s32.totalorder (!%p1759_p9), %s1419_s25, 0 }
  0x29   : > { %1357 = dma.done.wait (%p1760_p10), [#allocation3], 16   ;;  %p1761_p11 = pmov %p1760_p10 }
  0x2a   : > { %p1762_p7 = pmov %p1760_p10 }
  0x2b   : > { %1359 = vsyncadd (%p1761_p11), [#allocation3], 4294967280 }
  0x2c   : > { %1361 = dma.done.wait (%p1762_p7), [#allocation5], 16   ;;  %p1763_p2 = pmov %p1762_p7 }
  0x2e   : > { %1363 = vsyncadd (%p1763_p2), [#allocation5], 4294967280 }
  0x2f   : > { %279 = sfence }
  0x30   : > { %v1302_v0 = vld [vmem:[%s1750_s3] sm:$0xff]   ;;  %p311_p3 = scmp.lt.s32.totalorder %s1419_s25, 1  ;;  %v1304_v2 = vld [vmem:[%s1750_s3 + $0x8] sm:$0xff]   ;;  %s1477_s26 = sld [smem:[#allocation2 + %s1419_s25]]  ;;  %v1306_v4 = vld [vmem:[%s1750_s3 + $0x10] sm:$0xff]   ;;  %vm654_vm0 = vcmask 523264  }
  0x31   : > { %v1303_v1 = vld [vmem:[%s1749_s2] sm:$0xff]   ;;  %1182 = vmatprep.subr.bf16.mxu0 %v1302_v0  ;;  %v1474_v3 = vld [vmem:[%s1749_s2 + $0x8] sm:$0xff]   ;;  %v1487_v5 = vld [vmem:[%s1749_s2 + $0x10] sm:$0xff]   ;;  %s1498_s14 = sld [smem:[#allocation4 + %s1419_s25]]  ;;  %vm1370_vm1 = vmmov 1   ;;  %v1371_v54 = vmov 0  }
  0x32   : > { %s1469_s21 = scalar_select %p311_p3, %s1419_s25, 1  ;;  %1238 = vmatprep.subr.bf16.mxu1 %v1303_v1  ;;  %1183 = vmatpush3.bf16.msra.mxu0 %v1302_v0  ;;  %v1308_v6 = vld [vmem:[%s1750_s3 + $0x18] sm:$0xff]   ;;  %v1518_v9 = vld [vmem:[%s1749_s2 + $0x20] sm:$0xff]   ;;  %v1535_v12 = vld [vmem:[%s1749_s2 + $0x28] sm:$0xff]   ;;  %vm1372_vm3 = vmmov 0  }
  0x33   : > { %1246 = vmatpush3.bf16.msra.mxu1 %v1303_v1  ;;  %1184 = vmatprep.subr.bf16.mxu0 %v1304_v2  ;;  %v1506_v8 = vld [vmem:[%s1749_s2 + $0x18] sm:$0xff]   ;;  %v1554_v20 = vld [vmem:[%s1749_s2 + $0x30] sm:$0xff]   ;;  %vm1611_vm2 = vmpackc.low %vm1370_vm1, %vm1370_vm1 }
  0x34   : > { %s1151_s29 = sshll.u32 %s1469_s21, 6  ;;  %1239 = vmatprep.subr.bf16.mxu1 %v1474_v3  ;;  %v1587_v36 = vld [vmem:[%s1749_s2 + $0x38] sm:$0xff]   ;;  %vm1657_vm4 = vmpackc.low %vm1372_vm3, %vm1372_vm3  ;;  %v1705_v50 = vld [vmem:[%s1751_s4] ss:$0 sm:$0xff] }
  0x35   : > { %s1492_s11 = scalar_lea.vmem %s1748_s1, %s1151_s29  ;;  %s1524_s30 = scalar_lea.vmem %s1747_s0, %s1151_s29 }
  0x36   : > { %1185 = vmatpush3.bf16.msra.mxu0 %v1304_v2  ;;  %v1310_v7 = vld [vmem:[%s1492_s11] sm:$0xff]   ;;  %s330_s17 = sshrl.u32 %s1477_s26, 16  ;;  %p329_p5 = scmp.ne.f32.partialorder %s1477_s26, %s1477_s26  ;;  %v1311_v10 = vld [vmem:[%s1492_s11 + $0x8] sm:$0xff]   ;;  %v1314_v11 = vld [vmem:[%s1492_s11 + $0x10] sm:$0xff]  }
  0x37   : > { %1247 = vmatpush3.bf16.msra.mxu1 %v1474_v3  ;;  %1186 = vmatprep.subr.bf16.mxu0 %v1306_v4  ;;  %s331_s25 = sand.u32 1, %s330_s17  ;;  %p340_p12 = scmp.ne.f32.partialorder %s1498_s14, %s1498_s14  ;;  %v353_v13 = vld [vmem:[%s1524_s30 + $0x10] sm:$0xf]  ;;  %v354_v14 = vld [vmem:[%s1524_s30 + $0x14] sm:$0xf]  ;;  %v1315_v17 = vld [vmem:[%s1492_s11 + $0x18] sm:$0xff]  }
  0x38   : > { %1240 = vmatprep.subr.bf16.mxu1 %v1487_v5  ;;  %1190 = vmatprep.mubr.msk.bf16.mxu0 %vm654_vm0, %v1310_v7  ;;  %s332_s18 = sadd.s32 32767, %s331_s25  ;;  %v355_v15 = vld [vmem:[%s1524_s30 + $0x18] sm:$0xf]  ;;  %v356_v16 = vld [vmem:[%s1524_s30 + $0x1c] sm:$0xf]  ;;  %v1318_v24 = vld [vmem:[%s1492_s11 + $0x20] sm:$0xff]  }
  0x39   : > { %s333_s19 = sadd.s32 %s332_s18, %s1477_s26  ;;  %s341_s26 = sshrl.u32 %s1498_s14, 16  ;;  %v357_v19 = vld [vmem:[%s1524_s30 + $0x20] sm:$0xf]  ;;  %v358_v21 = vld [vmem:[%s1524_s30 + $0x24] sm:$0xf]  ;;  %v1319_v59 = vld [vmem:[%s1492_s11 + $0x28] sm:$0xff]  }
  0x3a   : > { %1187 = vmatpush3.bf16.msra.mxu0 %v1306_v4  ;;  %s334_s23 = sand.u32 4294901760, %s333_s19  ;;  %s342_s29 = sand.u32 1, %s341_s26  ;;  %v359_v22 = vld [vmem:[%s1524_s30 + $0x28] sm:$0xf]  ;;  %v360_v23 = vld [vmem:[%s1524_s30 + $0x2c] sm:$0xf] }
  0x3b   : > { %1248 = vmatpush3.bf16.msra.mxu1 %v1487_v5  ;;  %1188 = vmatprep.subr.bf16.mxu0 %v1308_v6  ;;  %s1769_s23 = smov (%p329_p5, %s334_s23), 2143289344  ;;  %s343_s13 = sadd.s32 32767, %s342_s29  ;;  %v1569_v29 = vld [vmem:[%s1524_s30] sm:$0xf]  ;;  %v1572_v30 = vld [vmem:[%s1524_s30 + $0x4] sm:$0xf] }
  0x3c   : > { %1241 = vmatprep.subr.bf16.mxu1 %v1506_v8  ;;  %s337_s8 = sshrl.u32 %s1769_s23, 16  ;;  %s344_s16 = sadd.s32 %s343_s13, %s1498_s14  ;;  %v361_v34 = vld [vmem:[%s1524_s30 + $0x30] sm:$0xf]  ;;  %v1581_v35 = vld [vmem:[%s1524_s30 + $0x34] sm:$0xf] }
  0x3d   : > { %s365_s12 = sshll.u32 %s337_s8, 16  ;;  %s345_s17 = sand.u32 4294901760, %s344_s16  ;;  %v351_v41 = vld [vmem:[%s1524_s30 + $0x8] sm:$0xf]  ;;  %v352_v42 = vld [vmem:[%s1524_s30 + $0xc] sm:$0xf] }
  0x3e   : > { %1189 = vmatpush3.bf16.msra.mxu0 %v1308_v6  ;;  %s366_s15 = sor.u32 %s365_s12, %s337_s8  ;;  %s1771_s17 = smov (%p340_p12, %s345_s17), 2143289344  ;;  %v363_v0 = vld [vmem:[%s1524_s30 + $0x38] sm:$0xf]  ;;  %v1320_v7 = vld [vmem:[%s1492_s11 + $0x30] sm:$0xff]  }
  0x3f   : > { %1249 = vmatpush3.bf16.msra.mxu1 %v1506_v8  ;;  %1206 = vmatprep.subr.bf16.mxu0 %v1303_v1  ;;  %v1547_v18 = vstv %s366_s15  ;;  %s348_s19 = sshrl.u32 %s1771_s17, 16 }
  0x40   : > { %1242 = vmatprep.subr.bf16.mxu1 %v1518_v9  ;;  %v373_v25 = vmul.bf16 %v1547_v18, %v353_v13  ;;  %v374_v26 = vmul.bf16 %v1547_v18, %v354_v14  ;;  %v375_v27 = vmul.bf16 %v1547_v18, %v355_v15  ;;  %v376_v28 = vmul.bf16 %v1547_v18, %v356_v16  ;;  %s385_s14 = sshll.u32 %s348_s19, 16 }
  0x41   : > { %1191 = vmatmul.mubr.msk.bf16.vlgmr.msra.gmra.mrb[0].mxu0 %vm654_vm0, %v1311_v10  ;;  %v377_v31 = vmul.bf16 %v1547_v18, %v357_v19  ;;  %v378_v32 = vmul.bf16 %v1547_v18, %v358_v21  ;;  %v379_v33 = vmul.bf16 %v1547_v18, %v359_v22  ;;  %s386_s23 = sor.u32 %s385_s14, %s348_s19  ;;  %v380_v37 = vmul.bf16 %v1547_v18, %v360_v23 }
  0x42   : > { %1207 = vmatpush3.bf16.msra.mxu0 %v1303_v1  ;;  %1194 = vmatprep.mubr.msk.bf16.mxu0 %vm654_vm0, %v1314_v11  ;;  %v369_v38 = vmul.bf16 %v1547_v18, %v1569_v29  ;;  %v370_v39 = vmul.bf16 %v1547_v18, %v1572_v30  ;;  %v381_v40 = vmul.bf16 %v1547_v18, %v361_v34  ;;  %v1598_v43 = vstv %s386_s23 }
  0x43   : > { %1250 = vmatpush3.bf16.msra.mxu1 %v1518_v9  ;;  %1208 = vmatprep.subr.bf16.mxu0 %v1474_v3  ;;  %v382_v44 = vmul.bf16 %v1547_v18, %v1581_v35  ;;  %v371_v45 = vmul.bf16 %v1547_v18, %v351_v41  ;;  %v372_v46 = vmul.bf16 %v1547_v18, %v352_v42 }
  0x44   : > { %1243 = vmatprep.subr.bf16.mxu1 %v1535_v12  ;;  %v393_v47 = vadd.bf16 %v1598_v43, %v373_v25  ;;  %v394_v48 = vadd.bf16 %v1598_v43, %v374_v26  ;;  %v395_v49 = vadd.bf16 %v1598_v43, %v375_v27  ;;  %v396_v51 = vadd.bf16 %v1598_v43, %v376_v28  ;;  %v364_v27 = vld [vmem:[%s1524_s30 + $0x3c] sm:$0xf] }
  0x45   : > { %v397_v52 = vadd.bf16 %v1598_v43, %v377_v31  ;;  %v398_v53 = vadd.bf16 %v1598_v43, %v378_v32  ;;  %v399_v58 = vadd.bf16 %v1598_v43, %v379_v33  ;;  %v400_v63 = vadd.bf16 %v1598_v43, %v380_v37  ;;  %v1321_v32 = vld [vmem:[%s1492_s11 + $0x38] sm:$0xff]   ;;  %s1153_s11 = sshll.u32 %s1469_s21, 7 }
  0x46   : > { %1209 = vmatpush3.bf16.msra.mxu0 %v1474_v3  ;;  %v409_v55 = vmax.bf16 %v1371_v54, %v393_v47  ;;  %v410_v56 = vmax.bf16 %v1371_v54, %v394_v48  ;;  %v411_v57 = vmax.bf16 %v1371_v54, %v395_v49  ;;  %v412_v60 = vmax.bf16 %v1371_v54, %v396_v51  ;;  %s1710_s8 = scalar_lea.vmem %s1754_s7, %s1153_s11 }
  0x47   : > { %1251 = vmatpush3.bf16.msra.mxu1 %v1535_v12  ;;  %1210 = vmatprep.subr.bf16.mxu0 %v1487_v5  ;;  %v413_v61 = vmax.bf16 %v1371_v54, %v397_v52  ;;  %v414_v62 = vmax.bf16 %v1371_v54, %v398_v53  ;;  %v415_v4 = vmax.bf16 %v1371_v54, %v399_v58 }
  0x48   : > { %1244 = vmatprep.subr.bf16.mxu1 %v1554_v20  ;;  %v538_v1 = vsel %vm1611_vm2, %v409_v55, 0  ;;  %v539_v2 = vsel %vm1611_vm2, %v410_v56, 0  ;;  %v540_v3 = vsel %vm1611_vm2, %v411_v57, 0  ;;  %v541_v6 = vsel %vm1611_vm2, %v412_v60, 0 }
  0x49   : > { %1195 = vmatmul.mubr.msk.bf16.gmra.mrb[4].mxu0 %vm654_vm0, %v1315_v17  ;;  %v543_v10 = vsel %vm1611_vm2, %v414_v62, 0  ;;  %v1135_v11 = vcombine.low %v540_v3, %v541_v6  ;;  %v416_v14 = vmax.bf16 %v1371_v54, %v400_v63  ;;  %v383_v15 = vmul.bf16 %v1547_v18, %v363_v0 }
  0x4a   : > { %1211 = vmatpush3.bf16.msra.mxu0 %v1487_v5  ;;  %1198 = vmatprep.mubr.msk.bf16.mxu0 %vm654_vm0, %v1318_v24  ;;  %v1134_v5 = vcombine.low %v538_v1, %v539_v2  ;;  %v544_v16 = vsel %vm1611_vm2, %v415_v4, 0  ;;  %v389_v17 = vadd.bf16 %v1598_v43, %v369_v38  ;;  %v390_v19 = vadd.bf16 %v1598_v43, %v370_v39 }
  0x4b   : > { %1252 = vmatpush3.bf16.msra.mxu1 %v1554_v20  ;;  %1212 = vmatprep.subr.bf16.mxu0 %v1506_v8  ;;  %v401_v21 = vadd.bf16 %v1598_v43, %v381_v40  ;;  %v545_v22 = vsel %vm1611_vm2, %v416_v14, 0  ;;  %v402_v24 = vadd.bf16 %v1598_v43, %v382_v44  ;;  %v391_v25 = vadd.bf16 %v1598_v43, %v371_v45 }
  0x4c   : > { %1245 = vmatprep.subr.bf16.mxu1 %v1587_v36  ;;  %1226 = vmatprep.mubr.bf16.mxu1 %v1134_v5  ;;  %v392_v26 = vadd.bf16 %v1598_v43, %v372_v46  ;;  %v406_v28 = vmax.bf16 %v1371_v54, %v390_v19  ;;  %v1137_v29 = vcombine.low %v544_v16, %v545_v22 }
  0x4d   : > { %v417_v30 = vmax.bf16 %v1371_v54, %v401_v21  ;;  %v418_v31 = vmax.bf16 %v1371_v54, %v402_v24  ;;  %v384_v35 = vmul.bf16 %v1547_v18, %v364_v27  ;;  %v403_v37 = vadd.bf16 %v1598_v43, %v383_v15 }
  0x4e   : > { %1213 = vmatpush3.bf16.msra.mxu0 %v1506_v8  ;;  %v542_v8 = vsel %vm1611_vm2, %v413_v61, 0  ;;  %v535_v34 = vsel %vm1611_vm2, %v406_v28, 0  ;;  %v407_v40 = vmax.bf16 %v1371_v54, %v391_v25  ;;  %v408_v41 = vmax.bf16 %v1371_v54, %v392_v26 }
  0x4f   : > { %1253 = vmatpush3.bf16.msra.mxu1 %v1587_v36  ;;  %1214 = vmatprep.subr.bf16.mxu0 %v1518_v9  ;;  %v1136_v13 = vcombine.low %v542_v8, %v543_v10  ;;  %v546_v38 = vsel %vm1611_vm2, %v417_v30, 0  ;;  %v547_v39 = vsel %vm1611_vm2, %v418_v31, 0  ;;  %v404_v44 = vadd.bf16 %v1598_v43, %v384_v35 }
  0x50   : > { %v419_v18 = vmax.bf16 %v1371_v54, %v403_v37  ;;  %v1138_v45 = vcombine.low %v546_v38, %v547_v39  ;;  %v536_v46 = vsel %vm1611_vm2, %v407_v40, 0  ;;  %v537_v47 = vsel %vm1611_vm2, %v408_v41, 0 }
  0x51   : > { %1199 = vmatmul.mubr.msk.bf16.gmra.mrb[8].mxu0 %vm654_vm0, %v1319_v59  ;;  %v1133_v49 = vcombine.low %v536_v46, %v537_v47 }
  0x52   : > { %1227 = vmatmul.mubr.bf16.vlgmr.msra.gmra.mrb[0].mxu1 %v1135_v11  ;;  %1215 = vmatpush3.bf16.msra.mxu0 %v1518_v9  ;;  %v405_v9 = vmax.bf16 %v1371_v54, %v389_v17  ;;  %v548_v43 = vsel %vm1611_vm2, %v419_v18, 0 }
  0x53   : > { %1216 = vmatprep.subr.bf16.mxu0 %v1535_v12  ;;  %1202 = vmatprep.mubr.msk.bf16.mxu0 %vm654_vm0, %v1320_v7 }
  0x54   : > { %1230 = vmatprep.mubr.bf16.mxu1 %v1136_v13  ;;  %v534_v33 = vsel %vm1657_vm4, %v405_v9, 0 }
  0x55   : > { %v1132_v42 = vcombine.low %v534_v33, %v535_v34 }
  0x56   : > { %1217 = vmatpush3.bf16.msra.mxu0 %v1535_v12  ;;  %v420_v12 = vmax.bf16 %v1371_v54, %v404_v44 }
  0x57   : > { %1218 = vmatprep.subr.bf16.mxu0 %v1554_v20 }
  0x58   : > { %v549_v48 = vsel %vm1657_vm4, %v420_v12, 0 }
  0x59   : > { %1203 = vmatmul.mubr.msk.bf16.gmra.mrb[12].mxu0 %vm654_vm0, %v1321_v32 }
  0x5a   : > { %1231 = vmatmul.mubr.bf16.gmra.mrb[4].mxu1 %v1137_v29  ;;  %1219 = vmatpush3.bf16.msra.mxu0 %v1554_v20  ;;  %v1139_v20 = vcombine.low %v548_v43, %v549_v48 }
  0x5b   : > { %1220 = vmatprep.subr.bf16.mxu0 %v1587_v36  ;;  %1222 = vmatprep.mubr.bf16.mxu0 %v1132_v42 }
  0x5c   : > { %1234 = vmatprep.mubr.bf16.mxu1 %v1138_v45 }
  0x5e   : > { %1221 = vmatpush3.bf16.msra.mxu0 %v1587_v36 }
  0x61   : > { %1223 = vmatmul.mubr.bf16.vlgmr.msra.gmra.mrb[0].mxu0 %v1133_v49 }
  0x62   : > { %1235 = vmatmul.mubr.bf16.gmra.mrb[8].mxu1 %v1139_v20 }
 0x11c   : > { %v1196_v51 = vpop.f32.mrb[4].mxu0 }
 0x11d   : > { %v729_v52 = vpop.f32.mrb[5].mxu0 }
 0x11e   : > { %v1197_v53 = vpop.f32.mrb[6].mxu0 }
 0x11f   : > { %v732_v54 = vpop.f32.mrb[7].mxu0 }
 0x124   : > { %v1200_v55 = vpop.f32.mrb[8].mxu0 }
 0x125   : > { %v1228_v56 = vpop.f32.mrb[0].mxu1  ;;  %v745_v57 = vpop.f32.mrb[9].mxu0 }
 0x126   : > { %v931_v58 = vadd.f32 %v1228_v56, %v1196_v51  ;;  %v922_v59 = vpop.f32.mrb[1].mxu1  ;;  %v1201_v60 = vpop.f32.mrb[10].mxu0 }
 0x127   : > { %v923_v36 = vadd.f32 %v922_v59, %v729_v52  ;;  %v1229_v61 = vpop.f32.mrb[2].mxu1  ;;  %v748_v62 = vpop.f32.mrb[11].mxu0 }
 0x128   : > { %v982_v63 = vadd.f32 %v1705_v50, %v931_v58  ;;  %v934_v0 = vadd.f32 %v1229_v61, %v1197_v53  ;;  %v925_v1 = vpop.f32.mrb[3].mxu1 }
 0x129   : > { %v980_v2 = vadd.f32 %v1705_v50, %v923_v36  ;;  %v926_v3 = vadd.f32 %v925_v1, %v732_v54 }
 0x12a   : > { %998 = vst [vmem:[%s1710_s8 + $0x30] sm:$0xff] %v982_v63  ;;  %v983_v4 = vadd.f32 %v1705_v50, %v934_v0 }
 0x12b   : > { %996 = vst [vmem:[%s1710_s8 + $0x20] sm:$0xff] %v980_v2  ;;  %v981_v5 = vadd.f32 %v1705_v50, %v926_v3 }
 0x12c   : > { %999 = vst [vmem:[%s1710_s8 + $0x38] sm:$0xff] %v983_v4  ;;  %v1204_v6 = vpop.f32.mrb[12].mxu0 }
 0x12d   : > { %997 = vst [vmem:[%s1710_s8 + $0x28] sm:$0xff] %v981_v5  ;;  %v1232_v7 = vpop.f32.mrb[4].mxu1  ;;  %v761_v8 = vpop.f32.mrb[13].mxu0 }
 0x12e   : > { %v947_v10 = vadd.f32 %v1232_v7, %v1200_v55  ;;  %v938_v11 = vpop.f32.mrb[5].mxu1  ;;  %v1205_v13 = vpop.f32.mrb[14].mxu0 }
 0x12f   : > { %v939_v14 = vadd.f32 %v938_v11, %v745_v57  ;;  %v1233_v15 = vpop.f32.mrb[6].mxu1  ;;  %v764_v16 = vpop.f32.mrb[15].mxu0 }
 0x130   : > { %v986_v17 = vadd.f32 %v1705_v50, %v947_v10  ;;  %v950_v19 = vadd.f32 %v1233_v15, %v1201_v60  ;;  %v941_v21 = vpop.f32.mrb[7].mxu1 }
 0x131   : > { %v984_v22 = vadd.f32 %v1705_v50, %v939_v14  ;;  %v942_v23 = vadd.f32 %v941_v21, %v748_v62 }
 0x132   : > { %1002 = vst [vmem:[%s1710_s8 + $0x50] sm:$0xff] %v986_v17  ;;  %v987_v24 = vadd.f32 %v1705_v50, %v950_v19 }
 0x133   : > { %1000 = vst [vmem:[%s1710_s8 + $0x40] sm:$0xff] %v984_v22  ;;  %v985_v25 = vadd.f32 %v1705_v50, %v942_v23 }
 0x134   : > { %1003 = vst [vmem:[%s1710_s8 + $0x58] sm:$0xff] %v987_v24  ;;  %v1224_v26 = vpop.f32.mrb[0].mxu0 }
 0x135   : > { %1001 = vst [vmem:[%s1710_s8 + $0x48] sm:$0xff] %v985_v25  ;;  %v978_v27 = vadd.f32 %v1224_v26, %v1705_v50  ;;  %v1236_v9 = vpop.f32.mrb[8].mxu1  ;;  %v906_v28 = vpop.f32.mrb[1].mxu0 }
 0x136   : > { %v963_v29 = vadd.f32 %v1236_v9, %v1204_v6  ;;  %v976_v30 = vadd.f32 %v1705_v50, %v906_v28  ;;  %v954_v31 = vpop.f32.mrb[9].mxu1  ;;  %v1225_v32 = vpop.f32.mrb[2].mxu0 }
 0x137   : > { %994 = vst [vmem:[%s1710_s8 + $0x10] sm:$0xff] %v978_v27  ;;  %v955_v33 = vadd.f32 %v954_v31, %v761_v8  ;;  %v979_v34 = vadd.f32 %v1225_v32, %v1705_v50  ;;  %v1237_v35 = vpop.f32.mrb[10].mxu1  ;;  %v909_v37 = vpop.f32.mrb[3].mxu0 }
 0x138   : > { %v990_v38 = vadd.f32 %v1705_v50, %v963_v29  ;;  %992 = vst [vmem:[%s1710_s8] sm:$0xff] %v976_v30  ;;  %v966_v39 = vadd.f32 %v1237_v35, %v1205_v13  ;;  %v977_v40 = vadd.f32 %v1705_v50, %v909_v37  ;;  %v957_v41 = vpop.f32.mrb[11].mxu1 }
 0x139   : > { %v988_v42 = vadd.f32 %v1705_v50, %v955_v33  ;;  %995 = vst [vmem:[%s1710_s8 + $0x18] sm:$0xff] %v979_v34  ;;  %v958_v44 = vadd.f32 %v957_v41, %v764_v16 }
 0x13a   : > { %1006 = vst [vmem:[%s1710_s8 + $0x70] sm:$0xff] %v990_v38  ;;  %v991_v18 = vadd.f32 %v1705_v50, %v966_v39  ;;  %993 = vst [vmem:[%s1710_s8 + $0x8] sm:$0xff] %v977_v40 }
 0x13b   : > { %1004 = vst [vmem:[%s1710_s8 + $0x60] sm:$0xff] %v988_v42  ;;  %v989_v45 = vadd.f32 %v1705_v50, %v958_v44 }
 0x13c   : > { %1007 = vst [vmem:[%s1710_s8 + $0x78] sm:$0xff] %v991_v18 }
 0x13d   : > { %1005 = vst [vmem:[%s1710_s8 + $0x68] sm:$0xff] %v989_v45 }
 0x13e PF: > { %s19_s24 = sadd.s32 1, %s1366_s24  }
 0x13f   : > { %p16_p13 = scmp.ge.s32.totalorder %s19_s24, 4  }
 0x141   :  { %18 = sbr.rel (!%p16_p13) target bundleno = 2 (0x2), region = 90 }
 0x148   :  { %1029 = vsyncpa [#allocation3], 1 }
 0x149   :  { %1031 = vsyncpa [#allocation3 + $0x1], 1 }
 0x14a   :  { %1032 = vsyncpa [#allocation5], 1 }

</bundles_post_ra>
